<compile_context>
chip_gen: v7x
topology: tpu7x:2x2x1
jax: 0.10.0
libtpu: 0.0.40
codegen_flags: <defaults>
</compile_context>

<pallas_src>
import jax
import jax.numpy as jnp
from jax import lax
from jax.experimental import pallas as pl
from jax.experimental.pallas import tpu as pltpu

# ----------------------------- model config ---------------------------------
B = 2          # batch
S = 8          # sequence length
H = 32         # hidden size (config.hidden_size == config.dim)
NH = 2         # attention heads
DH = H // NH   # head dim
FF = 64        # FFN intermediate size
VOCAB = 100    # vocab size (embeddings only)
NLAYERS = 2    # number of encoder layers
EPS = 1e-5     # layer_norm_eps
BS = B * S


# ----------------------------- in-kernel math --------------------------------
def _gelu(t):
    # TODO(synk): PyTorch nn.GELU() defaults to the exact erf form; using the
    # tanh approximation since erf lowering on Mosaic is not guaranteed.
    return 0.5 * t * (1.0 + jnp.tanh(0.7978845608028654 * (t + 0.044715 * t * t * t)))


def _layer_norm(t, g, b):
    mu = jnp.mean(t, axis=-1, keepdims=True)
    var = jnp.mean((t - mu) * (t - mu), axis=-1, keepdims=True)
    return (t - mu) * lax.rsqrt(var + EPS) * g + b


# ------------------------ fully fused forward kernel -------------------------
def fused_kernel(x_ref, mask_ref, embln_ref,
                 wqkv_ref, bqkv_ref, wo_ref, vecs_ref,
                 w1_ref, b1_ref, w2_ref,
                 hw1_ref, hb1_ref, hw2_ref, hb2_ref,
                 out_ref):
    bf = jnp.bfloat16
    # Embedding LayerNorm (fused into the kernel). x: (B*S, H), rows permuted so
    # the B CLS tokens are rows 0..B-1 (permutation done in the wrapper).
    x = _layer_norm(x_ref[...], embln_ref[0], embln_ref[1])
    mask = mask_ref[...]                       # (B*S, B*S) additive bias
    scale = 1.0 / (DH ** 0.5)

    for l in range(NLAYERS):                   # static loop: hidden stays in VMEM
        # Fused QKV projection: one (B*S,H)@(H,3H) matmul per layer.
        qkv = jnp.dot(x.astype(bf), wqkv_ref[l],
                      preferred_element_type=jnp.float32) + bqkv_ref[l]
        qkv_b = qkv.astype(bf)

        ctx_parts = []
        for h in range(NH):                    # static head loop, lane slices only
            qh = qkv_b[:, h * DH:(h + 1) * DH]
            kh = qkv_b[:, H + h * DH:H + (h + 1) * DH]
            vh = qkv_b[:, 2 * H + h * DH:2 * H + (h + 1) * DH]
            # q @ k^T via contracting last dims -> transpose folded into MXU feed.
            s = lax.dot_general(qh, kh, (((1,), (1,)), ((), ())),
                                preferred_element_type=jnp.float32) * scale + mask
            m = jnp.max(s, axis=-1, keepdims=True)
            e = jnp.exp(s - m)
            p = e * pl.reciprocal(jnp.sum(e, axis=-1, keepdims=True), approx=True)
            ctx_parts.append(jnp.dot(p.astype(bf), vh,
                                     preferred_element_type=jnp.float32))
        # Lane-concatenate heads once, then a single output projection.
        ctx = jnp.concatenate(ctx_parts, axis=-1)             # (B*S, H)
        attn = jnp.dot(ctx.astype(bf), wo_ref[l],
                       preferred_element_type=jnp.float32)    # (B*S, H)

        vb = l * 6
        bo, g1, be1, b2_, g2, be2 = (vecs_ref[vb + i] for i in range(6))

        y = x + attn + bo
        if l == NLAYERS - 1:
            # Only the B CLS rows (rows 0..B-1) feed the last FFN / heads.
            y = y[0:B]
        x1 = _layer_norm(y, g1, be1)
        ffn_h = _gelu(jnp.dot(x1.astype(bf), w1_ref[l],
                              preferred_element_type=jnp.float32) + b1_ref[l])
        ffn = jnp.dot(ffn_h.astype(bf), w2_ref[l],
                      preferred_element_type=jnp.float32) + b2_
        x = _layer_norm(x1 + ffn, g2, be2)

    # x is now the (B, H) CLS feature. Merged classifier+ranker heads:
    # one GELU, one matmul against a block-diagonal (2H, 2) weight, one store.
    # TODO(synk): nn.Dropout(p=0.2) is identity in eval mode; training-mode RNG drop not implemented.
    hh = _gelu(jnp.dot(x.astype(bf), hw1_ref[...],
                       preferred_element_type=jnp.float32) + hb1_ref[...])
    out_ref[...] = jnp.dot(hh.astype(bf), hw2_ref[...],
                           preferred_element_type=jnp.float32) + hb2_ref[...]


def fused_forward(x, mask_bias, p):
    """x: (B*S, H) f32 permuted embeddings; mask_bias: (B*S, B*S) additive bias."""
    vmem = lambda: pl.BlockSpec(memory_space=pltpu.MemorySpace.VMEM)
    return pl.pallas_call(
        fused_kernel,
        out_shape=jax.ShapeDtypeStruct((B, 2), jnp.float32),
        in_specs=[vmem() for _ in range(14)],
        out_specs=vmem(),
        compiler_params=pltpu.CompilerParams(vmem_limit_bytes=8 * 1024 * 1024),
    )(x, mask_bias, p["embln"], p["wqkv"], p["bqkv"], p["wo"], p["vecs"],
      p["w1"], p["b1"], p["w2"], p["hw1"], p["hb1"], p["hw2"], p["hb2"])


# ----------------------------- parameter init --------------------------------
def init_params(key):
    def nrm(k, shape):
        return jax.random.normal(k, shape, dtype=jnp.float32) * 0.02

    keys = iter(jax.random.split(key, 256))
    p = {
        "word_emb": nrm(next(keys), (VOCAB, H)),
        "pos_emb": nrm(next(keys), (S, H)),
        "type_emb": nrm(next(keys), (1, H)),
        "emb_ln_g": jnp.ones((H,), jnp.float32),
        "emb_ln_b": jnp.zeros((H,), jnp.float32),
        "layers": [],
    }
    for _ in range(NLAYERS):
        lp = {
            "wq": nrm(next(keys), (H, H)), "bq": jnp.zeros((1, H), jnp.float32),
            "wk": nrm(next(keys), (H, H)), "bk": jnp.zeros((1, H), jnp.float32),
            "wv": nrm(next(keys), (H, H)), "bv": jnp.zeros((1, H), jnp.float32),
            "wo": nrm(next(keys), (H, H)), "bo": jnp.zeros((1, H), jnp.float32),
            "g1": jnp.ones((1, H), jnp.float32), "be1": jnp.zeros((1, H), jnp.float32),
            "w1": nrm(next(keys), (H, FF)), "b1": jnp.zeros((1, FF), jnp.float32),
            "w2": nrm(next(keys), (FF, H)), "b2": jnp.zeros((1, H), jnp.float32),
            "g2": jnp.ones((1, H), jnp.float32), "be2": jnp.zeros((1, H), jnp.float32),
        }
        p["layers"].append(lp)
    # classifier / ranker heads (Linear(H,H) -> GELU -> Dropout -> Linear(H,1))
    p.update({
        "cls_w1": nrm(next(keys), (H, H)), "cls_b1": jnp.zeros((1, H), jnp.float32),
        "cls_w2": nrm(next(keys), (H, 1)), "cls_b2": jnp.zeros((1, 1), jnp.float32),
        "rnk_w1": nrm(next(keys), (H, H)), "rnk_b1": jnp.zeros((1, H), jnp.float32),
        "rnk_w2": nrm(next(keys), (H, 1)), "rnk_b2": jnp.zeros((1, 1), jnp.float32),
    })
    return p


def pack_params(params):
    """Stack per-layer weights (Q/K/V fused, heads merged) and cast matmul
    weights to bf16 so the kernel only does leading-dim indexing + big dots."""
    bf = jnp.bfloat16
    wqkv, bqkv, wo, vecs, w1, b1, w2 = [], [], [], [], [], [], []
    for lp in params["layers"]:
        wqkv.append(jnp.concatenate([lp["wq"], lp["wk"], lp["wv"]], axis=-1))  # (H, 3H)
        bqkv.append(jnp.concatenate([lp["bq"], lp["bk"], lp["bv"]], axis=-1))  # (1, 3H)
        wo.append(lp["wo"])                                                    # (H, H) un-split
        vecs += [lp["bo"], lp["g1"], lp["be1"], lp["b2"], lp["g2"], lp["be2"]]
        w1.append(lp["w1"]); b1.append(lp["b1"]); w2.append(lp["w2"])

    # Merged classifier/ranker second layer as a block-diagonal (2H, 2) matrix.
    hw2_blk = jnp.zeros((2 * H, 2), jnp.float32)
    hw2_blk = hw2_blk.at[:H, 0:1].set(params["cls_w2"])
    hw2_blk = hw2_blk.at[H:, 1:2].set(params["rnk_w2"])

    return {
        "word_emb": params["word_emb"],
        "pos_emb": params["pos_emb"],
        "type_emb": params["type_emb"],
        "embln": jnp.stack([params["emb_ln_g"].reshape(1, H),
                            params["emb_ln_b"].reshape(1, H)]),          # (2, 1, H)
        "wqkv": jnp.stack(wqkv).astype(bf),                              # (L, H, 3H)
        "bqkv": jnp.stack(bqkv),                                         # (L, 1, 3H)
        "wo": jnp.stack(wo).astype(bf),                                  # (L, H, H)
        "vecs": jnp.stack(vecs, axis=0),                                 # (L*6, 1, H)
        "w1": jnp.stack(w1).astype(bf),                                  # (L, H, FF)
        "b1": jnp.stack(b1),                                             # (L, 1, FF)
        "w2": jnp.stack(w2).astype(bf),                                  # (L, FF, H)
        "hw1": jnp.concatenate([params["cls_w1"], params["rnk_w1"]],
                               axis=-1).astype(bf),                      # (H, 2H)
        "hb1": jnp.concatenate([params["cls_b1"], params["rnk_b1"]], axis=-1),  # (1, 2H)
        "hw2": hw2_blk.astype(bf),                                       # (2H, 2)
        "hb2": jnp.concatenate([params["cls_b2"], params["rnk_b2"]], axis=-1),  # (1, 2)
    }


# ----------------------------- forward (glue + kernel) -----------------------
@jax.jit
def codebert_forward(packed, token_ids, attn_mask, cell_nums):
    # NOTE: cell_nums accepted for signature fidelity but unused (as in the
    # original PyTorch forward).
    del cell_nums
    # Embedding gather (glue); LayerNorm is fused into the Pallas kernel.
    # TODO(synk): RoBERTa/CodeBERT offsets position ids by padding_idx+1 and skips
    # pad tokens; plain 0..S-1 positions are used here (fine for random weights).
    emb = (packed["word_emb"][token_ids]                  # (B, S, H)
           + packed["pos_emb"][None, :, :]
           + packed["type_emb"][None, :, :])
    x = emb.reshape(BS, H)

    # Permute rows so the B CLS tokens come first. Attention is permutation-
    # invariant given a matching mask, and this makes the final CLS extraction
    # a contiguous row slice inside the kernel.
    perm = jnp.concatenate(
        [jnp.arange(B, dtype=jnp.int32) * S]
        + [b * S + jnp.arange(1, S, dtype=jnp.int32) for b in range(B)])
    x = x[perm]

    # Full (B*S, B*S) additive attention bias: block-diagonal over batches,
    # padded keys masked, built in permuted row order.
    batch_of = perm // S
    tok_of = perm % S
    key_valid = attn_mask[batch_of, tok_of] > 0.5         # (B*S,)
    allowed = (batch_of[:, None] == batch_of[None, :]) & key_valid[None, :]
    mask_bias = jnp.where(allowed, 0.0, -1e9).astype(jnp.float32)

    out = fused_forward(x, mask_bias, packed)             # (B, 2)
    return out[:, 0:1], out[:, 1:2]                       # classifier, ranker


# ----------------------------------- main ------------------------------------
if __name__ == "__main__":
    key = jax.random.PRNGKey(0)
    k_par, k_ids = jax.random.split(key)
    params = init_params(k_par)
    packed = pack_params(params)

    token_ids = jax.random.randint(k_ids, (B, S), 0, VOCAB, dtype=jnp.int32)
    lengths = jnp.array([S, 5], dtype=jnp.int32)
    attn_mask = (jnp.arange(S)[None, :] < lengths[:, None]).astype(jnp.float32)  # (B, S)
    cell_nums = jnp.array([3, 2], dtype=jnp.int32)

    cls_out, rnk_out = codebert_forward(packed, token_ids, attn_mask, cell_nums)
    jax.block_until_ready((cls_out, rnk_out))
    assert cls_out.shape == (B, 1) and rnk_out.shape == (B, 1)
    print("KERNEL_OK")
</pallas_src>

<mosaic_0001>
module attributes {stable_mosaic.version = 11 : i64} {
  func.func @fused_kernel(%arg0: memref<16x32xf32, #tpu.memory_space<vmem>>, %arg1: memref<16x16xf32, #tpu.memory_space<vmem>>, %arg2: memref<2x1x32xf32, #tpu.memory_space<vmem>>, %arg3: memref<2x32x96xbf16, #tpu.memory_space<vmem>>, %arg4: memref<2x1x96xf32, #tpu.memory_space<vmem>>, %arg5: memref<2x32x32xbf16, #tpu.memory_space<vmem>>, %arg6: memref<12x1x32xf32, #tpu.memory_space<vmem>>, %arg7: memref<2x32x64xbf16, #tpu.memory_space<vmem>>, %arg8: memref<2x1x64xf32, #tpu.memory_space<vmem>>, %arg9: memref<2x64x32xbf16, #tpu.memory_space<vmem>>, %arg10: memref<32x64xbf16, #tpu.memory_space<vmem>>, %arg11: memref<1x64xf32, #tpu.memory_space<vmem>>, %arg12: memref<64x2xbf16, #tpu.memory_space<vmem>>, %arg13: memref<1x2xf32, #tpu.memory_space<vmem>>, %arg14: memref<2x2xf32, #tpu.memory_space<vmem>>) attributes {dimension_semantics = [], scalar_prefetch = 0 : i64, scratch_operands = 0 : i64, tpu.core_type = #tpu.core_type<tc>} {
    %c0 = arith.constant 0 : index
    %c0_0 = arith.constant 0 : index
    %0 = vector.load %arg0[%c0, %c0_0] : memref<16x32xf32, #tpu.memory_space<vmem>>, vector<16x32xf32>
    %c0_1 = arith.constant 0 : index
    %c0_2 = arith.constant 0 : index
    %c0_3 = arith.constant 0 : index
    %1 = vector.load %arg2[%c0_1, %c0_2, %c0_3] : memref<2x1x32xf32, #tpu.memory_space<vmem>>, vector<1x1x32xf32>
    %2 = vector.shape_cast %1 : vector<1x1x32xf32> to vector<1x32xf32>
    %c1 = arith.constant 1 : index
    %c0_4 = arith.constant 0 : index
    %c0_5 = arith.constant 0 : index
    %3 = vector.load %arg2[%c1, %c0_4, %c0_5] : memref<2x1x32xf32, #tpu.memory_space<vmem>>, vector<1x1x32xf32>
    %4 = vector.shape_cast %3 : vector<1x1x32xf32> to vector<1x32xf32>
    %cst = arith.constant dense<0.000000e+00> : vector<16xf32>
    %5 = vector.multi_reduction <add>, %0, %cst [1] : vector<16x32xf32> to vector<16xf32>
    %6 = vector.shape_cast %5 : vector<16xf32> to vector<16x1xf32>
    %cst_6 = arith.constant 3.200000e+01 : f32
    %7 = vector.broadcast %cst_6 : f32 to vector<16x1xf32>
    %8 = arith.divf %6, %7 : vector<16x1xf32>
    %9 = vector.broadcast %8 : vector<16x1xf32> to vector<16x32xf32>
    %10 = arith.subf %0, %9 : vector<16x32xf32>
    %11 = vector.broadcast %8 : vector<16x1xf32> to vector<16x32xf32>
    %12 = arith.subf %0, %11 : vector<16x32xf32>
    %13 = arith.mulf %10, %12 : vector<16x32xf32>
    %cst_7 = arith.constant dense<0.000000e+00> : vector<16xf32>
    %14 = vector.multi_reduction <add>, %13, %cst_7 [1] : vector<16x32xf32> to vector<16xf32>
    %15 = vector.shape_cast %14 : vector<16xf32> to vector<16x1xf32>
    %cst_8 = arith.constant 3.200000e+01 : f32
    %16 = vector.broadcast %cst_8 : f32 to vector<16x1xf32>
    %17 = arith.divf %15, %16 : vector<16x1xf32>
    %18 = vector.broadcast %8 : vector<16x1xf32> to vector<16x32xf32>
    %19 = arith.subf %0, %18 : vector<16x32xf32>
    %cst_9 = arith.constant 9.99999974E-6 : f32
    %20 = vector.broadcast %cst_9 : f32 to vector<16x1xf32>
    %21 = arith.addf %17, %20 : vector<16x1xf32>
    %22 = math.rsqrt %21 : vector<16x1xf32>
    %23 = vector.broadcast %22 : vector<16x1xf32> to vector<16x32xf32>
    %24 = arith.mulf %19, %23 : vector<16x32xf32>
    %25 = vector.broadcast %2 : vector<1x32xf32> to vector<16x32xf32>
    %26 = arith.mulf %24, %25 : vector<16x32xf32>
    %27 = vector.broadcast %4 : vector<1x32xf32> to vector<16x32xf32>
    %28 = arith.addf %26, %27 : vector<16x32xf32>
    %c0_10 = arith.constant 0 : index
    %c0_11 = arith.constant 0 : index
    %29 = vector.load %arg1[%c0_10, %c0_11] : memref<16x16xf32, #tpu.memory_space<vmem>>, vector<16x16xf32>
    %30 = arith.truncf %28 : vector<16x32xf32> to vector<16x32xbf16>
    %c0_12 = arith.constant 0 : index
    %c0_13 = arith.constant 0 : index
    %c0_14 = arith.constant 0 : index
    %31 = vector.load %arg3[%c0_12, %c0_13, %c0_14] : memref<2x32x96xbf16, #tpu.memory_space<vmem>>, vector<1x32x96xbf16>
    %32 = vector.shape_cast %31 : vector<1x32x96xbf16> to vector<32x96xbf16>
    %cst_15 = arith.constant dense<0.000000e+00> : vector<16x96xf32>
    %33 = tpu.matmul %30, %32, %cst_15 {dimension_numbers = #tpu.dot_dimension_numbers<[1], [0], [0], [1], [0, 0, 1, 1], [], []>} : vector<16x32xbf16>, vector<32x96xbf16>, vector<16x96xf32> -> vector<16x96xf32>
    %c0_16 = arith.constant 0 : index
    %c0_17 = arith.constant 0 : index
    %c0_18 = arith.constant 0 : index
    %34 = vector.load %arg4[%c0_16, %c0_17, %c0_18] : memref<2x1x96xf32, #tpu.memory_space<vmem>>, vector<1x1x96xf32>
    %35 = vector.shape_cast %34 : vector<1x1x96xf32> to vector<1x96xf32>
    %36 = vector.broadcast %35 : vector<1x96xf32> to vector<16x96xf32>
    %37 = arith.addf %33, %36 : vector<16x96xf32>
    %38 = arith.truncf %37 : vector<16x96xf32> to vector<16x96xbf16>
    %39 = vector.extract_strided_slice %38 {offsets = [0, 0], sizes = [16, 16], strides = [1, 1]} : vector<16x96xbf16> to vector<16x16xbf16>
    %40 = vector.extract_strided_slice %38 {offsets = [0, 32], sizes = [16, 16], strides = [1, 1]} : vector<16x96xbf16> to vector<16x16xbf16>
    %41 = vector.extract_strided_slice %38 {offsets = [0, 64], sizes = [16, 16], strides = [1, 1]} : vector<16x96xbf16> to vector<16x16xbf16>
    %cst_19 = arith.constant dense<0.000000e+00> : vector<16x16xf32>
    %42 = tpu.matmul %39, %40, %cst_19 {dimension_numbers = #tpu.dot_dimension_numbers<[1], [1], [0], [0], [0, 0, 1, 0], [], []>} : vector<16x16xbf16>, vector<16x16xbf16>, vector<16x16xf32> -> vector<16x16xf32>
    %cst_20 = arith.constant 2.500000e-01 : f32
    %43 = vector.broadcast %cst_20 : f32 to vector<16x16xf32>
    %44 = arith.mulf %42, %43 : vector<16x16xf32>
    %45 = arith.addf %44, %29 : vector<16x16xf32>
    %cst_21 = arith.constant dense<0xFF800000> : vector<16xf32>
    %46 = vector.multi_reduction <maximumf>, %45, %cst_21 [1] : vector<16x16xf32> to vector<16xf32>
    %47 = vector.shape_cast %46 : vector<16xf32> to vector<16x1xf32>
    %48 = vector.broadcast %47 : vector<16x1xf32> to vector<16x16xf32>
    %49 = arith.subf %45, %48 : vector<16x16xf32>
    %50 = math.exp %49 : vector<16x16xf32>
    %cst_22 = arith.constant dense<0.000000e+00> : vector<16xf32>
    %51 = vector.multi_reduction <add>, %50, %cst_22 [1] : vector<16x16xf32> to vector<16xf32>
    %52 = vector.shape_cast %51 : vector<16xf32> to vector<16x1xf32>
    %53 = tpu.reciprocal %52 {approx = true} : vector<16x1xf32> -> vector<16x1xf32>
    %54 = vector.broadcast %53 : vector<16x1xf32> to vector<16x16xf32>
    %55 = arith.mulf %50, %54 : vector<16x16xf32>
    %56 = arith.truncf %55 : vector<16x16xf32> to vector<16x16xbf16>
    %cst_23 = arith.constant dense<0.000000e+00> : vector<16x16xf32>
    %57 = tpu.matmul %56, %41, %cst_23 {dimension_numbers = #tpu.dot_dimension_numbers<[1], [0], [0], [1], [0, 0, 1, 1], [], []>} : vector<16x16xbf16>, vector<16x16xbf16>, vector<16x16xf32> -> vector<16x16xf32>
    %58 = vector.extract_strided_slice %38 {offsets = [0, 16], sizes = [16, 16], strides = [1, 1]} : vector<16x96xbf16> to vector<16x16xbf16>
    %59 = vector.extract_strided_slice %38 {offsets = [0, 48], sizes = [16, 16], strides = [1, 1]} : vector<16x96xbf16> to vector<16x16xbf16>
    %60 = vector.extract_strided_slice %38 {offsets = [0, 80], sizes = [16, 16], strides = [1, 1]} : vector<16x96xbf16> to vector<16x16xbf16>
    %cst_24 = arith.constant dense<0.000000e+00> : vector<16x16xf32>
    %61 = tpu.matmul %58, %59, %cst_24 {dimension_numbers = #tpu.dot_dimension_numbers<[1], [1], [0], [0], [0, 0, 1, 0], [], []>} : vector<16x16xbf16>, vector<16x16xbf16>, vector<16x16xf32> -> vector<16x16xf32>
    %cst_25 = arith.constant 2.500000e-01 : f32
    %62 = vector.broadcast %cst_25 : f32 to vector<16x16xf32>
    %63 = arith.mulf %61, %62 : vector<16x16xf32>
    %64 = arith.addf %63, %29 : vector<16x16xf32>
    %cst_26 = arith.constant dense<0xFF800000> : vector<16xf32>
    %65 = vector.multi_reduction <maximumf>, %64, %cst_26 [1] : vector<16x16xf32> to vector<16xf32>
    %66 = vector.shape_cast %65 : vector<16xf32> to vector<16x1xf32>
    %67 = vector.broadcast %66 : vector<16x1xf32> to vector<16x16xf32>
    %68 = arith.subf %64, %67 : vector<16x16xf32>
    %69 = math.exp %68 : vector<16x16xf32>
    %cst_27 = arith.constant dense<0.000000e+00> : vector<16xf32>
    %70 = vector.multi_reduction <add>, %69, %cst_27 [1] : vector<16x16xf32> to vector<16xf32>
    %71 = vector.shape_cast %70 : vector<16xf32> to vector<16x1xf32>
    %72 = tpu.reciprocal %71 {approx = true} : vector<16x1xf32> -> vector<16x1xf32>
    %73 = vector.broadcast %72 : vector<16x1xf32> to vector<16x16xf32>
    %74 = arith.mulf %69, %73 : vector<16x16xf32>
    %75 = arith.truncf %74 : vector<16x16xf32> to vector<16x16xbf16>
    %cst_28 = arith.constant dense<0.000000e+00> : vector<16x16xf32>
    %76 = tpu.matmul %75, %60, %cst_28 {dimension_numbers = #tpu.dot_dimension_numbers<[1], [0], [0], [1], [0, 0, 1, 1], [], []>} : vector<16x16xbf16>, vector<16x16xbf16>, vector<16x16xf32> -> vector<16x16xf32>
    %77 = tpu.concatenate %57, %76 in 1 : vector<16x16xf32>, vector<16x16xf32> -> vector<16x32xf32>
    %78 = arith.truncf %77 : vector<16x32xf32> to vector<16x32xbf16>
    %c0_29 = arith.constant 0 : index
    %c0_30 = arith.constant 0 : index
    %c0_31 = arith.constant 0 : index
    %79 = vector.load %arg5[%c0_29, %c0_30, %c0_31] : memref<2x32x32xbf16, #tpu.memory_space<vmem>>, vector<1x32x32xbf16>
    %80 = vector.shape_cast %79 : vector<1x32x32xbf16> to vector<32x32xbf16>
    %cst_32 = arith.constant dense<0.000000e+00> : vector<16x32xf32>
    %81 = tpu.matmul %78, %80, %cst_32 {dimension_numbers = #tpu.dot_dimension_numbers<[1], [0], [0], [1], [0, 0, 1, 1], [], []>} : vector<16x32xbf16>, vector<32x32xbf16>, vector<16x32xf32> -> vector<16x32xf32>
    %c0_33 = arith.constant 0 : index
    %c0_34 = arith.constant 0 : index
    %c0_35 = arith.constant 0 : index
    %82 = vector.load %arg6[%c0_33, %c0_34, %c0_35] : memref<12x1x32xf32, #tpu.memory_space<vmem>>, vector<1x1x32xf32>
    %83 = vector.shape_cast %82 : vector<1x1x32xf32> to vector<1x32xf32>
    %c1_36 = arith.constant 1 : index
    %c0_37 = arith.constant 0 : index
    %c0_38 = arith.constant 0 : index
    %84 = vector.load %arg6[%c1_36, %c0_37, %c0_38] : memref<12x1x32xf32, #tpu.memory_space<vmem>>, vector<1x1x32xf32>
    %85 = vector.shape_cast %84 : vector<1x1x32xf32> to vector<1x32xf32>
    %c2 = arith.constant 2 : index
    %c0_39 = arith.constant 0 : index
    %c0_40 = arith.constant 0 : index
    %86 = vector.load %arg6[%c2, %c0_39, %c0_40] : memref<12x1x32xf32, #tpu.memory_space<vmem>>, vector<1x1x32xf32>
    %87 = vector.shape_cast %86 : vector<1x1x32xf32> to vector<1x32xf32>
    %c3 = arith.constant 3 : index
    %c0_41 = arith.constant 0 : index
    %c0_42 = arith.constant 0 : index
    %88 = vector.load %arg6[%c3, %c0_41, %c0_42] : memref<12x1x32xf32, #tpu.memory_space<vmem>>, vector<1x1x32xf32>
    %89 = vector.shape_cast %88 : vector<1x1x32xf32> to vector<1x32xf32>
    %c4 = arith.constant 4 : index
    %c0_43 = arith.constant 0 : index
    %c0_44 = arith.constant 0 : index
    %90 = vector.load %arg6[%c4, %c0_43, %c0_44] : memref<12x1x32xf32, #tpu.memory_space<vmem>>, vector<1x1x32xf32>
    %91 = vector.shape_cast %90 : vector<1x1x32xf32> to vector<1x32xf32>
    %c5 = arith.constant 5 : index
    %c0_45 = arith.constant 0 : index
    %c0_46 = arith.constant 0 : index
    %92 = vector.load %arg6[%c5, %c0_45, %c0_46] : memref<12x1x32xf32, #tpu.memory_space<vmem>>, vector<1x1x32xf32>
    %93 = vector.shape_cast %92 : vector<1x1x32xf32> to vector<1x32xf32>
    %94 = arith.addf %28, %81 : vector<16x32xf32>
    %95 = vector.broadcast %83 : vector<1x32xf32> to vector<16x32xf32>
    %96 = arith.addf %94, %95 : vector<16x32xf32>
    %cst_47 = arith.constant dense<0.000000e+00> : vector<16xf32>
    %97 = vector.multi_reduction <add>, %96, %cst_47 [1] : vector<16x32xf32> to vector<16xf32>
    %98 = vector.shape_cast %97 : vector<16xf32> to vector<16x1xf32>
    %cst_48 = arith.constant 3.200000e+01 : f32
    %99 = vector.broadcast %cst_48 : f32 to vector<16x1xf32>
    %100 = arith.divf %98, %99 : vector<16x1xf32>
    %101 = vector.broadcast %100 : vector<16x1xf32> to vector<16x32xf32>
    %102 = arith.subf %96, %101 : vector<16x32xf32>
    %103 = vector.broadcast %100 : vector<16x1xf32> to vector<16x32xf32>
    %104 = arith.subf %96, %103 : vector<16x32xf32>
    %105 = arith.mulf %102, %104 : vector<16x32xf32>
    %cst_49 = arith.constant dense<0.000000e+00> : vector<16xf32>
    %106 = vector.multi_reduction <add>, %105, %cst_49 [1] : vector<16x32xf32> to vector<16xf32>
    %107 = vector.shape_cast %106 : vector<16xf32> to vector<16x1xf32>
    %cst_50 = arith.constant 3.200000e+01 : f32
    %108 = vector.broadcast %cst_50 : f32 to vector<16x1xf32>
    %109 = arith.divf %107, %108 : vector<16x1xf32>
    %110 = vector.broadcast %100 : vector<16x1xf32> to vector<16x32xf32>
    %111 = arith.subf %96, %110 : vector<16x32xf32>
    %cst_51 = arith.constant 9.99999974E-6 : f32
    %112 = vector.broadcast %cst_51 : f32 to vector<16x1xf32>
    %113 = arith.addf %109, %112 : vector<16x1xf32>
    %114 = math.rsqrt %113 : vector<16x1xf32>
    %115 = vector.broadcast %114 : vector<16x1xf32> to vector<16x32xf32>
    %116 = arith.mulf %111, %115 : vector<16x32xf32>
    %117 = vector.broadcast %85 : vector<1x32xf32> to vector<16x32xf32>
    %118 = arith.mulf %116, %117 : vector<16x32xf32>
    %119 = vector.broadcast %87 : vector<1x32xf32> to vector<16x32xf32>
    %120 = arith.addf %118, %119 : vector<16x32xf32>
    %121 = arith.truncf %120 : vector<16x32xf32> to vector<16x32xbf16>
    %c0_52 = arith.constant 0 : index
    %c0_53 = arith.constant 0 : index
    %c0_54 = arith.constant 0 : index
    %122 = vector.load %arg7[%c0_52, %c0_53, %c0_54] : memref<2x32x64xbf16, #tpu.memory_space<vmem>>, vector<1x32x64xbf16>
    %123 = vector.shape_cast %122 : vector<1x32x64xbf16> to vector<32x64xbf16>
    %cst_55 = arith.constant dense<0.000000e+00> : vector<16x64xf32>
    %124 = tpu.matmul %121, %123, %cst_55 {dimension_numbers = #tpu.dot_dimension_numbers<[1], [0], [0], [1], [0, 0, 1, 1], [], []>} : vector<16x32xbf16>, vector<32x64xbf16>, vector<16x64xf32> -> vector<16x64xf32>
    %c0_56 = arith.constant 0 : index
    %c0_57 = arith.constant 0 : index
    %c0_58 = arith.constant 0 : index
    %125 = vector.load %arg8[%c0_56, %c0_57, %c0_58] : memref<2x1x64xf32, #tpu.memory_space<vmem>>, vector<1x1x64xf32>
    %126 = vector.shape_cast %125 : vector<1x1x64xf32> to vector<1x64xf32>
    %127 = vector.broadcast %126 : vector<1x64xf32> to vector<16x64xf32>
    %128 = arith.addf %124, %127 : vector<16x64xf32>
    %cst_59 = arith.constant 5.000000e-01 : f32
    %129 = vector.broadcast %cst_59 : f32 to vector<16x64xf32>
    %130 = arith.mulf %129, %128 : vector<16x64xf32>
    %cst_60 = arith.constant 4.471500e-02 : f32
    %131 = vector.broadcast %cst_60 : f32 to vector<16x64xf32>
    %132 = arith.mulf %131, %128 : vector<16x64xf32>
    %133 = arith.mulf %132, %128 : vector<16x64xf32>
    %134 = arith.mulf %133, %128 : vector<16x64xf32>
    %135 = arith.addf %128, %134 : vector<16x64xf32>
    %cst_61 = arith.constant 0.797884583 : f32
    %136 = vector.broadcast %cst_61 : f32 to vector<16x64xf32>
    %137 = arith.mulf %136, %135 : vector<16x64xf32>
    %138 = math.tanh %137 : vector<16x64xf32>
    %cst_62 = arith.constant 1.000000e+00 : f32
    %139 = vector.broadcast %cst_62 : f32 to vector<16x64xf32>
    %140 = arith.addf %139, %138 : vector<16x64xf32>
    %141 = arith.mulf %130, %140 : vector<16x64xf32>
    %142 = arith.truncf %141 : vector<16x64xf32> to vector<16x64xbf16>
    %c0_63 = arith.constant 0 : index
    %c0_64 = arith.constant 0 : index
    %c0_65 = arith.constant 0 : index
    %143 = vector.load %arg9[%c0_63, %c0_64, %c0_65] : memref<2x64x32xbf16, #tpu.memory_space<vmem>>, vector<1x64x32xbf16>
    %144 = vector.shape_cast %143 : vector<1x64x32xbf16> to vector<64x32xbf16>
    %cst_66 = arith.constant dense<0.000000e+00> : vector<16x32xf32>
    %145 = tpu.matmul %142, %144, %cst_66 {dimension_numbers = #tpu.dot_dimension_numbers<[1], [0], [0], [1], [0, 0, 1, 1], [], []>} : vector<16x64xbf16>, vector<64x32xbf16>, vector<16x32xf32> -> vector<16x32xf32>
    %146 = vector.broadcast %89 : vector<1x32xf32> to vector<16x32xf32>
    %147 = arith.addf %145, %146 : vector<16x32xf32>
    %148 = arith.addf %120, %147 : vector<16x32xf32>
    %cst_67 = arith.constant dense<0.000000e+00> : vector<16xf32>
    %149 = vector.multi_reduction <add>, %148, %cst_67 [1] : vector<16x32xf32> to vector<16xf32>
    %150 = vector.shape_cast %149 : vector<16xf32> to vector<16x1xf32>
    %cst_68 = arith.constant 3.200000e+01 : f32
    %151 = vector.broadcast %cst_68 : f32 to vector<16x1xf32>
    %152 = arith.divf %150, %151 : vector<16x1xf32>
    %153 = vector.broadcast %152 : vector<16x1xf32> to vector<16x32xf32>
    %154 = arith.subf %148, %153 : vector<16x32xf32>
    %155 = vector.broadcast %152 : vector<16x1xf32> to vector<16x32xf32>
    %156 = arith.subf %148, %155 : vector<16x32xf32>
    %157 = arith.mulf %154, %156 : vector<16x32xf32>
    %cst_69 = arith.constant dense<0.000000e+00> : vector<16xf32>
    %158 = vector.multi_reduction <add>, %157, %cst_69 [1] : vector<16x32xf32> to vector<16xf32>
    %159 = vector.shape_cast %158 : vector<16xf32> to vector<16x1xf32>
    %cst_70 = arith.constant 3.200000e+01 : f32
    %160 = vector.broadcast %cst_70 : f32 to vector<16x1xf32>
    %161 = arith.divf %159, %160 : vector<16x1xf32>
    %162 = vector.broadcast %152 : vector<16x1xf32> to vector<16x32xf32>
    %163 = arith.subf %148, %162 : vector<16x32xf32>
    %cst_71 = arith.constant 9.99999974E-6 : f32
    %164 = vector.broadcast %cst_71 : f32 to vector<16x1xf32>
    %165 = arith.addf %161, %164 : vector<16x1xf32>
    %166 = math.rsqrt %165 : vector<16x1xf32>
    %167 = vector.broadcast %166 : vector<16x1xf32> to vector<16x32xf32>
    %168 = arith.mulf %163, %167 : vector<16x32xf32>
    %169 = vector.broadcast %91 : vector<1x32xf32> to vector<16x32xf32>
    %170 = arith.mulf %168, %169 : vector<16x32xf32>
    %171 = vector.broadcast %93 : vector<1x32xf32> to vector<16x32xf32>
    %172 = arith.addf %170, %171 : vector<16x32xf32>
    %173 = arith.truncf %172 : vector<16x32xf32> to vector<16x32xbf16>
    %c1_72 = arith.constant 1 : index
    %c0_73 = arith.constant 0 : index
    %c0_74 = arith.constant 0 : index
    %174 = vector.load %arg3[%c1_72, %c0_73, %c0_74] : memref<2x32x96xbf16, #tpu.memory_space<vmem>>, vector<1x32x96xbf16>
    %175 = vector.shape_cast %174 : vector<1x32x96xbf16> to vector<32x96xbf16>
    %cst_75 = arith.constant dense<0.000000e+00> : vector<16x96xf32>
    %176 = tpu.matmul %173, %175, %cst_75 {dimension_numbers = #tpu.dot_dimension_numbers<[1], [0], [0], [1], [0, 0, 1, 1], [], []>} : vector<16x32xbf16>, vector<32x96xbf16>, vector<16x96xf32> -> vector<16x96xf32>
    %c1_76 = arith.constant 1 : index
    %c0_77 = arith.constant 0 : index
    %c0_78 = arith.constant 0 : index
    %177 = vector.load %arg4[%c1_76, %c0_77, %c0_78] : memref<2x1x96xf32, #tpu.memory_space<vmem>>, vector<1x1x96xf32>
    %178 = vector.shape_cast %177 : vector<1x1x96xf32> to vector<1x96xf32>
    %179 = vector.broadcast %178 : vector<1x96xf32> to vector<16x96xf32>
    %180 = arith.addf %176, %179 : vector<16x96xf32>
    %181 = arith.truncf %180 : vector<16x96xf32> to vector<16x96xbf16>
    %182 = vector.extract_strided_slice %181 {offsets = [0, 0], sizes = [16, 16], strides = [1, 1]} : vector<16x96xbf16> to vector<16x16xbf16>
    %183 = vector.extract_strided_slice %181 {offsets = [0, 32], sizes = [16, 16], strides = [1, 1]} : vector<16x96xbf16> to vector<16x16xbf16>
    %184 = vector.extract_strided_slice %181 {offsets = [0, 64], sizes = [16, 16], strides = [1, 1]} : vector<16x96xbf16> to vector<16x16xbf16>
    %cst_79 = arith.constant dense<0.000000e+00> : vector<16x16xf32>
    %185 = tpu.matmul %182, %183, %cst_79 {dimension_numbers = #tpu.dot_dimension_numbers<[1], [1], [0], [0], [0, 0, 1, 0], [], []>} : vector<16x16xbf16>, vector<16x16xbf16>, vector<16x16xf32> -> vector<16x16xf32>
    %cst_80 = arith.constant 2.500000e-01 : f32
    %186 = vector.broadcast %cst_80 : f32 to vector<16x16xf32>
    %187 = arith.mulf %185, %186 : vector<16x16xf32>
    %188 = arith.addf %187, %29 : vector<16x16xf32>
    %cst_81 = arith.constant dense<0xFF800000> : vector<16xf32>
    %189 = vector.multi_reduction <maximumf>, %188, %cst_81 [1] : vector<16x16xf32> to vector<16xf32>
    %190 = vector.shape_cast %189 : vector<16xf32> to vector<16x1xf32>
    %191 = vector.broadcast %190 : vector<16x1xf32> to vector<16x16xf32>
    %192 = arith.subf %188, %191 : vector<16x16xf32>
    %193 = math.exp %192 : vector<16x16xf32>
    %cst_82 = arith.constant dense<0.000000e+00> : vector<16xf32>
    %194 = vector.multi_reduction <add>, %193, %cst_82 [1] : vector<16x16xf32> to vector<16xf32>
    %195 = vector.shape_cast %194 : vector<16xf32> to vector<16x1xf32>
    %196 = tpu.reciprocal %195 {approx = true} : vector<16x1xf32> -> vector<16x1xf32>
    %197 = vector.broadcast %196 : vector<16x1xf32> to vector<16x16xf32>
    %198 = arith.mulf %193, %197 : vector<16x16xf32>
    %199 = arith.truncf %198 : vector<16x16xf32> to vector<16x16xbf16>
    %cst_83 = arith.constant dense<0.000000e+00> : vector<16x16xf32>
    %200 = tpu.matmul %199, %184, %cst_83 {dimension_numbers = #tpu.dot_dimension_numbers<[1], [0], [0], [1], [0, 0, 1, 1], [], []>} : vector<16x16xbf16>, vector<16x16xbf16>, vector<16x16xf32> -> vector<16x16xf32>
    %201 = vector.extract_strided_slice %181 {offsets = [0, 16], sizes = [16, 16], strides = [1, 1]} : vector<16x96xbf16> to vector<16x16xbf16>
    %202 = vector.extract_strided_slice %181 {offsets = [0, 48], sizes = [16, 16], strides = [1, 1]} : vector<16x96xbf16> to vector<16x16xbf16>
    %203 = vector.extract_strided_slice %181 {offsets = [0, 80], sizes = [16, 16], strides = [1, 1]} : vector<16x96xbf16> to vector<16x16xbf16>
    %cst_84 = arith.constant dense<0.000000e+00> : vector<16x16xf32>
    %204 = tpu.matmul %201, %202, %cst_84 {dimension_numbers = #tpu.dot_dimension_numbers<[1], [1], [0], [0], [0, 0, 1, 0], [], []>} : vector<16x16xbf16>, vector<16x16xbf16>, vector<16x16xf32> -> vector<16x16xf32>
    %cst_85 = arith.constant 2.500000e-01 : f32
    %205 = vector.broadcast %cst_85 : f32 to vector<16x16xf32>
    %206 = arith.mulf %204, %205 : vector<16x16xf32>
    %207 = arith.addf %206, %29 : vector<16x16xf32>
    %cst_86 = arith.constant dense<0xFF800000> : vector<16xf32>
    %208 = vector.multi_reduction <maximumf>, %207, %cst_86 [1] : vector<16x16xf32> to vector<16xf32>
    %209 = vector.shape_cast %208 : vector<16xf32> to vector<16x1xf32>
    %210 = vector.broadcast %209 : vector<16x1xf32> to vector<16x16xf32>
    %211 = arith.subf %207, %210 : vector<16x16xf32>
    %212 = math.exp %211 : vector<16x16xf32>
    %cst_87 = arith.constant dense<0.000000e+00> : vector<16xf32>
    %213 = vector.multi_reduction <add>, %212, %cst_87 [1] : vector<16x16xf32> to vector<16xf32>
    %214 = vector.shape_cast %213 : vector<16xf32> to vector<16x1xf32>
    %215 = tpu.reciprocal %214 {approx = true} : vector<16x1xf32> -> vector<16x1xf32>
    %216 = vector.broadcast %215 : vector<16x1xf32> to vector<16x16xf32>
    %217 = arith.mulf %212, %216 : vector<16x16xf32>
    %218 = arith.truncf %217 : vector<16x16xf32> to vector<16x16xbf16>
    %cst_88 = arith.constant dense<0.000000e+00> : vector<16x16xf32>
    %219 = tpu.matmul %218, %203, %cst_88 {dimension_numbers = #tpu.dot_dimension_numbers<[1], [0], [0], [1], [0, 0, 1, 1], [], []>} : vector<16x16xbf16>, vector<16x16xbf16>, vector<16x16xf32> -> vector<16x16xf32>
    %220 = tpu.concatenate %200, %219 in 1 : vector<16x16xf32>, vector<16x16xf32> -> vector<16x32xf32>
    %221 = arith.truncf %220 : vector<16x32xf32> to vector<16x32xbf16>
    %c1_89 = arith.constant 1 : index
    %c0_90 = arith.constant 0 : index
    %c0_91 = arith.constant 0 : index
    %222 = vector.load %arg5[%c1_89, %c0_90, %c0_91] : memref<2x32x32xbf16, #tpu.memory_space<vmem>>, vector<1x32x32xbf16>
    %223 = vector.shape_cast %222 : vector<1x32x32xbf16> to vector<32x32xbf16>
    %cst_92 = arith.constant dense<0.000000e+00> : vector<16x32xf32>
    %224 = tpu.matmul %221, %223, %cst_92 {dimension_numbers = #tpu.dot_dimension_numbers<[1], [0], [0], [1], [0, 0, 1, 1], [], []>} : vector<16x32xbf16>, vector<32x32xbf16>, vector<16x32xf32> -> vector<16x32xf32>
    %c6 = arith.constant 6 : index
    %c0_93 = arith.constant 0 : index
    %c0_94 = arith.constant 0 : index
    %225 = vector.load %arg6[%c6, %c0_93, %c0_94] : memref<12x1x32xf32, #tpu.memory_space<vmem>>, vector<1x1x32xf32>
    %226 = vector.shape_cast %225 : vector<1x1x32xf32> to vector<1x32xf32>
    %c7 = arith.constant 7 : index
    %c0_95 = arith.constant 0 : index
    %c0_96 = arith.constant 0 : index
    %227 = vector.load %arg6[%c7, %c0_95, %c0_96] : memref<12x1x32xf32, #tpu.memory_space<vmem>>, vector<1x1x32xf32>
    %228 = vector.shape_cast %227 : vector<1x1x32xf32> to vector<1x32xf32>
    %c8 = arith.constant 8 : index
    %c0_97 = arith.constant 0 : index
    %c0_98 = arith.constant 0 : index
    %229 = vector.load %arg6[%c8, %c0_97, %c0_98] : memref<12x1x32xf32, #tpu.memory_space<vmem>>, vector<1x1x32xf32>
    %230 = vector.shape_cast %229 : vector<1x1x32xf32> to vector<1x32xf32>
    %c9 = arith.constant 9 : index
    %c0_99 = arith.constant 0 : index
    %c0_100 = arith.constant 0 : index
    %231 = vector.load %arg6[%c9, %c0_99, %c0_100] : memref<12x1x32xf32, #tpu.memory_space<vmem>>, vector<1x1x32xf32>
    %232 = vector.shape_cast %231 : vector<1x1x32xf32> to vector<1x32xf32>
    %c10 = arith.constant 10 : index
    %c0_101 = arith.constant 0 : index
    %c0_102 = arith.constant 0 : index
    %233 = vector.load %arg6[%c10, %c0_101, %c0_102] : memref<12x1x32xf32, #tpu.memory_space<vmem>>, vector<1x1x32xf32>
    %234 = vector.shape_cast %233 : vector<1x1x32xf32> to vector<1x32xf32>
    %c11 = arith.constant 11 : index
    %c0_103 = arith.constant 0 : index
    %c0_104 = arith.constant 0 : index
    %235 = vector.load %arg6[%c11, %c0_103, %c0_104] : memref<12x1x32xf32, #tpu.memory_space<vmem>>, vector<1x1x32xf32>
    %236 = vector.shape_cast %235 : vector<1x1x32xf32> to vector<1x32xf32>
    %237 = arith.addf %172, %224 : vector<16x32xf32>
    %238 = vector.broadcast %226 : vector<1x32xf32> to vector<16x32xf32>
    %239 = arith.addf %237, %238 : vector<16x32xf32>
    %240 = vector.extract_strided_slice %239 {offsets = [0, 0], sizes = [2, 32], strides = [1, 1]} : vector<16x32xf32> to vector<2x32xf32>
    %cst_105 = arith.constant dense<0.000000e+00> : vector<2xf32>
    %241 = vector.multi_reduction <add>, %240, %cst_105 [1] : vector<2x32xf32> to vector<2xf32>
    %242 = vector.shape_cast %241 : vector<2xf32> to vector<2x1xf32>
    %cst_106 = arith.constant 3.200000e+01 : f32
    %243 = vector.broadcast %cst_106 : f32 to vector<2x1xf32>
    %244 = arith.divf %242, %243 : vector<2x1xf32>
    %245 = vector.broadcast %244 : vector<2x1xf32> to vector<2x32xf32>
    %246 = arith.subf %240, %245 : vector<2x32xf32>
    %247 = vector.broadcast %244 : vector<2x1xf32> to vector<2x32xf32>
    %248 = arith.subf %240, %247 : vector<2x32xf32>
    %249 = arith.mulf %246, %248 : vector<2x32xf32>
    %cst_107 = arith.constant dense<0.000000e+00> : vector<2xf32>
    %250 = vector.multi_reduction <add>, %249, %cst_107 [1] : vector<2x32xf32> to vector<2xf32>
    %251 = vector.shape_cast %250 : vector<2xf32> to vector<2x1xf32>
    %cst_108 = arith.constant 3.200000e+01 : f32
    %252 = vector.broadcast %cst_108 : f32 to vector<2x1xf32>
    %253 = arith.divf %251, %252 : vector<2x1xf32>
    %254 = vector.broadcast %244 : vector<2x1xf32> to vector<2x32xf32>
    %255 = arith.subf %240, %254 : vector<2x32xf32>
    %cst_109 = arith.constant 9.99999974E-6 : f32
    %256 = vector.broadcast %cst_109 : f32 to vector<2x1xf32>
    %257 = arith.addf %253, %256 : vector<2x1xf32>
    %258 = math.rsqrt %257 : vector<2x1xf32>
    %259 = vector.broadcast %258 : vector<2x1xf32> to vector<2x32xf32>
    %260 = arith.mulf %255, %259 : vector<2x32xf32>
    %261 = vector.broadcast %228 : vector<1x32xf32> to vector<2x32xf32>
    %262 = arith.mulf %260, %261 : vector<2x32xf32>
    %263 = vector.broadcast %230 : vector<1x32xf32> to vector<2x32xf32>
    %264 = arith.addf %262, %263 : vector<2x32xf32>
    %265 = arith.truncf %264 : vector<2x32xf32> to vector<2x32xbf16>
    %c1_110 = arith.constant 1 : index
    %c0_111 = arith.constant 0 : index
    %c0_112 = arith.constant 0 : index
    %266 = vector.load %arg7[%c1_110, %c0_111, %c0_112] : memref<2x32x64xbf16, #tpu.memory_space<vmem>>, vector<1x32x64xbf16>
    %267 = vector.shape_cast %266 : vector<1x32x64xbf16> to vector<32x64xbf16>
    %cst_113 = arith.constant dense<0.000000e+00> : vector<2x64xf32>
    %268 = tpu.matmul %265, %267, %cst_113 {dimension_numbers = #tpu.dot_dimension_numbers<[1], [0], [0], [1], [0, 0, 1, 1], [], []>} : vector<2x32xbf16>, vector<32x64xbf16>, vector<2x64xf32> -> vector<2x64xf32>
    %c1_114 = arith.constant 1 : index
    %c0_115 = arith.constant 0 : index
    %c0_116 = arith.constant 0 : index
    %269 = vector.load %arg8[%c1_114, %c0_115, %c0_116] : memref<2x1x64xf32, #tpu.memory_space<vmem>>, vector<1x1x64xf32>
    %270 = vector.shape_cast %269 : vector<1x1x64xf32> to vector<1x64xf32>
    %271 = vector.broadcast %270 : vector<1x64xf32> to vector<2x64xf32>
    %272 = arith.addf %268, %271 : vector<2x64xf32>
    %cst_117 = arith.constant 5.000000e-01 : f32
    %273 = vector.broadcast %cst_117 : f32 to vector<2x64xf32>
    %274 = arith.mulf %273, %272 : vector<2x64xf32>
    %cst_118 = arith.constant 4.471500e-02 : f32
    %275 = vector.broadcast %cst_118 : f32 to vector<2x64xf32>
    %276 = arith.mulf %275, %272 : vector<2x64xf32>
    %277 = arith.mulf %276, %272 : vector<2x64xf32>
    %278 = arith.mulf %277, %272 : vector<2x64xf32>
    %279 = arith.addf %272, %278 : vector<2x64xf32>
    %cst_119 = arith.constant 0.797884583 : f32
    %280 = vector.broadcast %cst_119 : f32 to vector<2x64xf32>
    %281 = arith.mulf %280, %279 : vector<2x64xf32>
    %282 = math.tanh %281 : vector<2x64xf32>
    %cst_120 = arith.constant 1.000000e+00 : f32
    %283 = vector.broadcast %cst_120 : f32 to vector<2x64xf32>
    %284 = arith.addf %283, %282 : vector<2x64xf32>
    %285 = arith.mulf %274, %284 : vector<2x64xf32>
    %286 = arith.truncf %285 : vector<2x64xf32> to vector<2x64xbf16>
    %c1_121 = arith.constant 1 : index
    %c0_122 = arith.constant 0 : index
    %c0_123 = arith.constant 0 : index
    %287 = vector.load %arg9[%c1_121, %c0_122, %c0_123] : memref<2x64x32xbf16, #tpu.memory_space<vmem>>, vector<1x64x32xbf16>
    %288 = vector.shape_cast %287 : vector<1x64x32xbf16> to vector<64x32xbf16>
    %cst_124 = arith.constant dense<0.000000e+00> : vector<2x32xf32>
    %289 = tpu.matmul %286, %288, %cst_124 {dimension_numbers = #tpu.dot_dimension_numbers<[1], [0], [0], [1], [0, 0, 1, 1], [], []>} : vector<2x64xbf16>, vector<64x32xbf16>, vector<2x32xf32> -> vector<2x32xf32>
    %290 = vector.broadcast %232 : vector<1x32xf32> to vector<2x32xf32>
    %291 = arith.addf %289, %290 : vector<2x32xf32>
    %292 = arith.addf %264, %291 : vector<2x32xf32>
    %cst_125 = arith.constant dense<0.000000e+00> : vector<2xf32>
    %293 = vector.multi_reduction <add>, %292, %cst_125 [1] : vector<2x32xf32> to vector<2xf32>
    %294 = vector.shape_cast %293 : vector<2xf32> to vector<2x1xf32>
    %cst_126 = arith.constant 3.200000e+01 : f32
    %295 = vector.broadcast %cst_126 : f32 to vector<2x1xf32>
    %296 = arith.divf %294, %295 : vector<2x1xf32>
    %297 = vector.broadcast %296 : vector<2x1xf32> to vector<2x32xf32>
    %298 = arith.subf %292, %297 : vector<2x32xf32>
    %299 = vector.broadcast %296 : vector<2x1xf32> to vector<2x32xf32>
    %300 = arith.subf %292, %299 : vector<2x32xf32>
    %301 = arith.mulf %298, %300 : vector<2x32xf32>
    %cst_127 = arith.constant dense<0.000000e+00> : vector<2xf32>
    %302 = vector.multi_reduction <add>, %301, %cst_127 [1] : vector<2x32xf32> to vector<2xf32>
    %303 = vector.shape_cast %302 : vector<2xf32> to vector<2x1xf32>
    %cst_128 = arith.constant 3.200000e+01 : f32
    %304 = vector.broadcast %cst_128 : f32 to vector<2x1xf32>
    %305 = arith.divf %303, %304 : vector<2x1xf32>
    %306 = vector.broadcast %296 : vector<2x1xf32> to vector<2x32xf32>
    %307 = arith.subf %292, %306 : vector<2x32xf32>
    %cst_129 = arith.constant 9.99999974E-6 : f32
    %308 = vector.broadcast %cst_129 : f32 to vector<2x1xf32>
    %309 = arith.addf %305, %308 : vector<2x1xf32>
    %310 = math.rsqrt %309 : vector<2x1xf32>
    %311 = vector.broadcast %310 : vector<2x1xf32> to vector<2x32xf32>
    %312 = arith.mulf %307, %311 : vector<2x32xf32>
    %313 = vector.broadcast %234 : vector<1x32xf32> to vector<2x32xf32>
    %314 = arith.mulf %312, %313 : vector<2x32xf32>
    %315 = vector.broadcast %236 : vector<1x32xf32> to vector<2x32xf32>
    %316 = arith.addf %314, %315 : vector<2x32xf32>
    %317 = arith.truncf %316 : vector<2x32xf32> to vector<2x32xbf16>
    %c0_130 = arith.constant 0 : index
    %c0_131 = arith.constant 0 : index
    %318 = vector.load %arg10[%c0_130, %c0_131] : memref<32x64xbf16, #tpu.memory_space<vmem>>, vector<32x64xbf16>
    %cst_132 = arith.constant dense<0.000000e+00> : vector<2x64xf32>
    %319 = tpu.matmul %317, %318, %cst_132 {dimension_numbers = #tpu.dot_dimension_numbers<[1], [0], [0], [1], [0, 0, 1, 1], [], []>} : vector<2x32xbf16>, vector<32x64xbf16>, vector<2x64xf32> -> vector<2x64xf32>
    %c0_133 = arith.constant 0 : index
    %c0_134 = arith.constant 0 : index
    %320 = vector.load %arg11[%c0_133, %c0_134] : memref<1x64xf32, #tpu.memory_space<vmem>>, vector<1x64xf32>
    %321 = vector.broadcast %320 : vector<1x64xf32> to vector<2x64xf32>
    %322 = arith.addf %319, %321 : vector<2x64xf32>
    %cst_135 = arith.constant 5.000000e-01 : f32
    %323 = vector.broadcast %cst_135 : f32 to vector<2x64xf32>
    %324 = arith.mulf %323, %322 : vector<2x64xf32>
    %cst_136 = arith.constant 4.471500e-02 : f32
    %325 = vector.broadcast %cst_136 : f32 to vector<2x64xf32>
    %326 = arith.mulf %325, %322 : vector<2x64xf32>
    %327 = arith.mulf %326, %322 : vector<2x64xf32>
    %328 = arith.mulf %327, %322 : vector<2x64xf32>
    %329 = arith.addf %322, %328 : vector<2x64xf32>
    %cst_137 = arith.constant 0.797884583 : f32
    %330 = vector.broadcast %cst_137 : f32 to vector<2x64xf32>
    %331 = arith.mulf %330, %329 : vector<2x64xf32>
    %332 = math.tanh %331 : vector<2x64xf32>
    %cst_138 = arith.constant 1.000000e+00 : f32
    %333 = vector.broadcast %cst_138 : f32 to vector<2x64xf32>
    %334 = arith.addf %333, %332 : vector<2x64xf32>
    %335 = arith.mulf %324, %334 : vector<2x64xf32>
    %336 = arith.truncf %335 : vector<2x64xf32> to vector<2x64xbf16>
    %c0_139 = arith.constant 0 : index
    %c0_140 = arith.constant 0 : index
    %337 = vector.load %arg12[%c0_139, %c0_140] : memref<64x2xbf16, #tpu.memory_space<vmem>>, vector<64x2xbf16>
    %cst_141 = arith.constant dense<0.000000e+00> : vector<2x2xf32>
    %338 = tpu.matmul %336, %337, %cst_141 {dimension_numbers = #tpu.dot_dimension_numbers<[1], [0], [0], [1], [0, 0, 1, 1], [], []>} : vector<2x64xbf16>, vector<64x2xbf16>, vector<2x2xf32> -> vector<2x2xf32>
    %c0_142 = arith.constant 0 : index
    %c0_143 = arith.constant 0 : index
    %339 = vector.load %arg13[%c0_142, %c0_143] : memref<1x2xf32, #tpu.memory_space<vmem>>, vector<1x2xf32>
    %340 = vector.broadcast %339 : vector<1x2xf32> to vector<2x2xf32>
    %341 = arith.addf %338, %340 : vector<2x2xf32>
    %c0_144 = arith.constant 0 : index
    %c0_145 = arith.constant 0 : index
    %342 = vector.load %arg14[%c0_144, %c0_145] : memref<2x2xf32, #tpu.memory_space<vmem>>, vector<2x2xf32>
    tpu.vector_store %arg14[%c0_144, %c0_145], %341 {strides = array<i32>} : memref<2x2xf32, #tpu.memory_space<vmem>>, vector<2x2xf32>,
    return
  }
}

</mosaic_0001>

<bundles_post_ra>
// kernel: codebert_forward.1
= control target key start
LH: loop header
LB: loop body
LE: loop exit
PB: predicated region body
PF: predicated region fallthrough
CT: control target
= control target key end

     0   :  { %vm53_vm0 = vcmask 261120   ;;  %v1949_v15 = vmov 0.0   ;;  %vm1950_vm1 = vmmov 0   ;;  %s1952_s26 = smov 96   ;;  %s1953_s27 = smov 112   ;;  %vm171_vm2 = vcmask 130048   ;;  %s2365_s0 = inlined_call_operand.vmem [shape: f32[16,32], index: 0, kind: input, shape index: {}]   ;;  %s2366_s3 = inlined_call_operand.vmem [shape: bf16[2,32,96], index: 3, kind: input, shape index: {}]   ;;  %s2367_s2 = inlined_call_operand.vmem [shape: f32[2,1,32], index: 2, kind: input, shape index: {}]   ;;  %s2368_s4 = inlined_call_operand.vmem [shape: f32[2,1,96], index: 4, kind: input, shape index: {}]   ;;  %s2369_s1 = inlined_call_operand.vmem [shape: f32[16,16], index: 1, kind: input, shape index: {}]   ;;  %s2370_s5 = inlined_call_operand.vmem [shape: bf16[2,32,32], index: 5, kind: input, shape index: {}]   ;;  %s2371_s6 = inlined_call_operand.vmem [shape: f32[12,1,32], index: 6, kind: input, shape index: {}]   ;;  %s2372_s7 = inlined_call_operand.vmem [shape: bf16[2,32,64], index: 7, kind: input, shape index: {}]   ;;  %s2373_s9 = inlined_call_operand.vmem [shape: bf16[2,64,32], index: 9, kind: input, shape index: {}]   ;;  %s2374_s8 = inlined_call_operand.vmem [shape: f32[2,1,64], index: 8, kind: input, shape index: {}]   ;;  %s2375_s10 = inlined_call_operand.vmem [shape: bf16[32,64], index: 10, kind: input, shape index: {}]   ;;  %s2376_s12 = inlined_call_operand.vmem [shape: bf16[64,2], index: 12, kind: input, shape index: {}]   ;;  %s2377_s11 = inlined_call_operand.vmem [shape: f32[1,64], index: 11, kind: input, shape index: {}]   ;;  %s2378_s13 = inlined_call_operand.vmem [shape: f32[1,2], index: 13, kind: input, shape index: {}]   ;;  %s2379_s14 = inlined_call_operand.vmem [shape: f32[2,2], index: 14, kind: output, shape index: {}]  }
   0x1   :  { %v48_v0 = vld [vmem:[%s2365_s0] sm:$0xff]  ;;  %v49_v1 = vld [vmem:[%s2365_s0 + $0x8] sm:$0xff]  ;;  %1709 = vmatprep.subr.bf16.mxu0 %v1949_v15  ;;  %1717 = vmatprep.subr.bf16.mxu1 %v1949_v15  ;;  %s1955_s16 = smov 48   ;;  %s1956_s20 = smov 16   ;;  %vm677_vm3 = vcmask 523264   ;;  %vm1177_vm4 = vcmask 254976  }
   0x2   :  { %v54_v2 = vsel %vm53_vm0, %v48_v0, 0.0  ;;  %v57_v3 = vsel %vm53_vm0, %v49_v1, 0.0  ;;  %v1867_v14 = vld [vmem:[%s2366_s3] sm:$0xff]   ;;  %v1868_v16 = vld [vmem:[%s2366_s3 + $0x8] sm:$0xff]   ;;  %1713 = vmatprep.mubr.msk.bf16.mxu0 %vm1950_vm1, %v1949_v15  ;;  %1719 = vmatprep.mubr.msk.bf16.mxu1 %vm1950_vm1, %v1949_v15  ;;  %vm1553_vm5 = vcmask 9216  }
   0x3   :  { %55 = vadd.xlane.f32.xlu0 %v54_v2  ;;  %1710 = vmatpush3.bf16.msra.mxu0 %v1867_v14  ;;  %v1560_v25 = vld [vmem:[%s2367_s2] ss:$0 sm:$0xff]  ;;  %v1561_v29 = vld [vmem:[%s2367_s2 + $0x1] ss:$0 sm:$0xff]  ;;  %s1951_s2 = smov 80   ;;  %v2101_v52 = vld [vmem:[%s2369_s1 + $0x8] sm:$0xff] }
   0x4   :  { %1711 = vmatprep.subr.bf16.mxu0 %v1949_v15  ;;  %v1562_v34 = vld [vmem:[%s2368_s4] ss:$0 sm:$0xff] }
   0x5   :  { %v2096_v48 = vld [vmem:[%s2369_s1] sm:$0xff]  ;;  %s1954_s1 = smov 64  }
   0x7   :  { %58 = vadd.xlane.f32.xlu0 %v57_v3  ;;  %1712 = vmatpush3.bf16.msra.mxu0 %v1868_v16 }
   0x8   :  { %1723 = vmatprep.subr.bf16.mxu0 %v1949_v15 }
  0x90   :  { %v56_v4 = vpop.xlane.xlu0 %55 }
  0x91   :  { %v61_v5 = vmul.f32 0.03125, %v56_v4 }
  0x93   :  { %v63_v6 = vsub.f32 %v48_v0, %v61_v5 }
  0x94   :  { %v59_v7 = vpop.xlane.xlu0 %58 }
  0x95   :  { %v62_v8 = vmul.f32 0.03125, %v59_v7  ;;  %v65_v9 = vmul.f32 %v63_v6, %v63_v6 }
  0x97   :  { %v64_v10 = vsub.f32 %v49_v1, %v62_v8  ;;  %v67_v11 = vsel %vm53_vm0, %v65_v9, 0.0 }
  0x98   :  { %68 = vadd.xlane.f32.xlu1 %v67_v11 }
  0x99   :  { %v66_v12 = vmul.f32 %v64_v10, %v64_v10 }
  0x9b   :  { %v70_v13 = vsel %vm53_vm0, %v66_v12, 0.0 }
  0x9c   :  { %71 = vadd.xlane.f32.xlu1 %v70_v13 }
 0x125   :  { %v69_v17 = vpop.xlane.xlu1 %68 }
 0x126   :  { %v73_v18 = vmul.f32 0.03125, %v69_v17 }
 0x128   :  { %v75_v19 = vadd.f32 1e-05, %v73_v18 }
 0x129   :  { %v72_v20 = vpop.xlane.xlu1 %71 }
 0x12a   :  { %1893 = vrsqrt.f32 %v75_v19  ;;  %v74_v21 = vmul.f32 0.03125, %v72_v20 }
 0x12c   :  { %v76_v22 = vadd.f32 1e-05, %v74_v21 }
 0x12e   :  { %1895 = vrsqrt.f32 %v76_v22 }
 0x134   :  { %v1894_v23 = vpop.eup %1893 }
 0x135   :  { %v79_v24 = vmul.f32 %v1894_v23, %v63_v6 }
 0x137   :  { %v87_v28 = vmul.f32 %v1560_v25, %v79_v24 }
 0x138   :  { %v1896_v26 = vpop.eup %1895 }
 0x139   :  { %v80_v27 = vmul.f32 %v1896_v26, %v64_v10  ;;  %v2062_v31 = vadd.f32 %v1561_v29, %v87_v28 }
 0x13b   :  { %v88_v30 = vmul.f32 %v1560_v25, %v80_v27 }
 0x13d   :  { %v2064_v32 = vadd.f32 %v1561_v29, %v88_v30 }
 0x13f   :  { %v99_v33 = vpack.c.bf16 %v2064_v32, %v2062_v31 }
 0x141   :  { %1714 = vmatmul.mubr.msk.bf16.vlgmr.msra.gmra.mrb[0].mxu0 %vm53_vm0, %v99_v33 }
 0x142   :  { %1725 = vmatprep.mubr.msk.bf16.mxu0 %vm1950_vm1, %v1949_v15 }
 0x214   :  { %v160_v35 = vpop.f32.mrb[0].mxu0 }
 0x215   :  { %v1715_v36 = vpop.f32.mrb[1].mxu0  ;;  %v161_v38 = vadd.f32 %v1562_v34, %v160_v35 }
 0x216   :  { %v163_v37 = vpop.f32.mrb[2].mxu0 }
 0x217   :  { %v164_v39 = vadd.f32 %v1562_v34, %v163_v37  ;;  %v1716_v40 = vpop.f32.mrb[3].mxu0 }
 0x219   :  { %v2074_v41 = vpack.c.bf16 %v164_v39, %v161_v38 }
 0x21b   :  { %295 = vrot.lane.b32.xlu1 %v2074_v41, %s1951_s2  ;;  %169 = vrot.lane.b32.xlu0 %v2074_v41, %s1952_s26 }
 0x21f   :  { %293 = vrot.lane.b32.xlu1 %v2074_v41, %s1953_s27 }
 0x28d   :  { %v170_v42 = vpop.permute.xlu0 %169  ;;  %v296_v44 = vpop.permute.xlu1 %295 }
 0x28e   :  { %v176_v43 = vsel %vm171_vm2, %v170_v42, 0  ;;  %v301_v45 = vsel %vm171_vm2, %v296_v44, 0  ;;  %v1869_v44 = vld [vmem:[%s2370_s5] sm:$0xff]  }
 0x28f   :  { %1718 = vmatpush3.bf16.xpose.msra.mxu1 %v176_v43 }
 0x290   :  { %1729 = vmatprep.subr.bf16.mxu1 %v1949_v15 }
 0x291   :  { %v294_v46 = vpop.permute.xlu1 %293 }
 0x296   :  { %1720 = vmatmul.mubr.msk.bf16.vlgmr.msra.gmra.mrb[0].mxu1 %vm171_vm2, %v2074_v41 }
 0x297   :  { %1730 = vmatpush3.bf16.xpose.msra.mxu1 %v301_v45  ;;  %1731 = vmatprep.mubr.msk.bf16.mxu1 %vm1950_vm1, %v1949_v15 }
 0x298   :  { %1741 = vmatprep.subr.bf16.mxu1 %v1949_v15 }
 0x29e   :  { %1732 = vmatmul.mubr.msk.bf16.vlgmr.msra.gmra.mrb[4].mxu1 %vm171_vm2, %v294_v46 }
 0x29f   :  { %1745 = vmatprep.mubr.msk.bf16.mxu1 %vm1950_vm1, %v1949_v15  ;;  %1742 = vmatpush3.bf16.msra.mxu1 %v1869_v44  ;;  %v1581_v44 = vld [vmem:[%s2374_s8] ss:$0 sm:$0xff] }
 0x2a0   :  { %1743 = vmatprep.subr.bf16.mxu1 %v1949_v15 }
 0x369   :  { %v212_v47 = vpop.f32.mrb[0].mxu1 }
 0x36a   :  { %v219_v49 = vmul.f32 0.25, %v212_v47  ;;  %v1721_v50 = vpop.f32.mrb[1].mxu1 }
 0x36b   :  { %v215_v51 = vpop.f32.mrb[2].mxu1  ;;  %v1870_v50 = vld [vmem:[%s2370_s5 + $0x8] sm:$0xff]  }
 0x36c   :  { %v220_v53 = vmul.f32 0.25, %v215_v51  ;;  %v1722_v54 = vpop.f32.mrb[3].mxu1  ;;  %v221_v55 = vadd.f32 %v219_v49, %v2096_v48  ;;  %1744 = vmatpush3.bf16.msra.mxu1 %v1870_v50 }
 0x36d   :  { %1757 = vmatprep.subr.bf16.mxu1 %v1949_v15 }
 0x36e   :  { %v223_v56 = vsel %vm171_vm2, %v221_v55, -inf  ;;  %v222_v57 = vadd.f32 %v220_v53, %v2101_v52 }
 0x36f   :  { %224 = vmax.xlane.f32.xlu1 %v223_v56 }
 0x370   :  { %v226_v58 = vsel %vm171_vm2, %v222_v57, -inf }
 0x371   :  { %227 = vmax.xlane.f32.xlu0 %v226_v58  ;;  %v337_v59 = vpop.f32.mrb[4].mxu1 }
 0x372   :  { %v344_v60 = vmul.f32 0.25, %v337_v59  ;;  %v1733_v61 = vpop.f32.mrb[5].mxu1 }
 0x373   :  { %v340_v62 = vpop.f32.mrb[6].mxu1 }
 0x374   :  { %v345_v63 = vmul.f32 0.25, %v340_v62  ;;  %v1734_v0 = vpop.f32.mrb[7].mxu1  ;;  %v346_v1 = vadd.f32 %v344_v60, %v2096_v48 }
 0x375   :  { %v1578_v0 = vld [vmem:[%s2371_s6] ss:$0 sm:$0xff] }
 0x376   :  { %v348_v2 = vsel %vm171_vm2, %v346_v1, -inf  ;;  %v347_v3 = vadd.f32 %v345_v63, %v2101_v52 }
 0x377   :  { %349 = vmax.xlane.f32.xlu0 %v348_v2 }
 0x378   :  { %v351_v4 = vsel %vm171_vm2, %v347_v3, -inf }
 0x37b   :  { %352 = vmax.xlane.f32.xlu0 %v351_v4 }
 0x3fc   :  { %v225_v5 = vpop.xlane.xlu1 %224 }
 0x3fd   :  { %v229_v6 = vsub.f32 %v221_v55, %v225_v5 }
 0x3fe   :  { %v228_v7 = vpop.xlane.xlu0 %227 }
 0x3ff   :  { %v231_v8 = vmul.f32 1.442695, %v229_v6  ;;  %v230_v9 = vsub.f32 %v222_v57, %v228_v7 }
 0x401   :  { %1897 = vpow2.f32 %v231_v8  ;;  %v233_v10 = vmul.f32 1.442695, %v230_v9 }
 0x403   :  { %1899 = vpow2.f32 %v233_v10 }
 0x404   :  { %v350_v11 = vpop.xlane.xlu0 %349 }
 0x405   :  { %v354_v12 = vsub.f32 %v346_v1, %v350_v11 }
 0x407   :  { %v356_v13 = vmul.f32 1.442695, %v354_v12 }
 0x408   :  { %v353_v14 = vpop.xlane.xlu0 %352 }
 0x409   :  { %1901 = vpow2.f32 %v356_v13  ;;  %v355_v16 = vsub.f32 %v347_v3, %v353_v14 }
 0x40b   :  { %v1898_v17 = vpop.eup %1897  ;;  %v358_v18 = vmul.f32 1.442695, %v355_v16 }
 0x40c   :  { %v235_v19 = vsel %vm171_vm2, %v1898_v17, 0.0 }
 0x40d   :  { %v1900_v20 = vpop.eup %1899  ;;  %1903 = vpow2.f32 %v358_v18  ;;  %236 = vadd.xlane.f32.xlu1 %v235_v19  ;;  %v1871_v19 = vld [vmem:[%s2372_s7] sm:$0xff]  }
 0x40e   :  { %v238_v21 = vsel %vm171_vm2, %v1900_v20, 0.0 }
 0x40f   :  { %239 = vadd.xlane.f32.xlu0 %v238_v21 }
 0x413   :  { %v1902_v22 = vpop.eup %1901 }
 0x414   :  { %v360_v23 = vsel %vm171_vm2, %v1902_v22, 0.0 }
 0x415   :  { %361 = vadd.xlane.f32.xlu1 %v360_v23 }
 0x417   :  { %v1904_v24 = vpop.eup %1903 }
 0x418   :  { %v363_v25 = vsel %vm171_vm2, %v1904_v24, 0.0 }
 0x419   :  { %364 = vadd.xlane.f32.xlu0 %v363_v25 }
 0x426   :  { %246 = vrot.lane.b32.xlu1 %v2074_v41, %s1954_s1 }
 0x42f   :  { %371 = vrot.lane.b32.xlu0 %v2074_v41, %s1955_s16 }
 0x49a   :  { %v237_v26 = vpop.xlane.xlu1 %236 }
 0x49b   :  { %1905 = vrcp.f32 %v237_v26 }
 0x49c   :  { %v240_v27 = vpop.xlane.xlu0 %239 }
 0x49d   :  { %1907 = vrcp.f32 %v240_v27 }
 0x4a2   :  { %v362_v28 = vpop.xlane.xlu1 %361 }
 0x4a3   :  { %1909 = vrcp.f32 %v362_v28  ;;  %v1579_v28 = vld [vmem:[%s2371_s6 + $0x1] ss:$0 sm:$0xff] }
 0x4a5   :  { %v1906_v29 = vpop.eup %1905 }
 0x4a6   :  { %v247_v30 = vpop.permute.xlu1 %246  ;;  %v365_v33 = vpop.xlane.xlu0 %364  ;;  %v243_v35 = vmul.f32 %v1906_v29, %v1898_v17 }
 0x4a7   :  { %v1908_v34 = vpop.eup %1907  ;;  %1911 = vrcp.f32 %v365_v33  ;;  %1724 = vmatpush3.bf16.msra.mxu0 %v247_v30 }
 0x4a8   :  { %v244_v36 = vmul.f32 %v1908_v34, %v1900_v20  ;;  %1735 = vmatprep.subr.bf16.mxu0 %v1949_v15  ;;  %v1872_v20 = vld [vmem:[%s2372_s7 + $0x8] sm:$0xff]  }
 0x4aa   :  { %v372_v37 = vpop.permute.xlu0 %371  ;;  %v245_v38 = vpack.c.bf16 %v244_v36, %v243_v35  ;;  %v1580_v35 = vld [vmem:[%s2371_s6 + $0x2] ss:$0 sm:$0xff] }
 0x4ac   :  { %1726 = vmatmul.mubr.msk.bf16.vlgmr.msra.gmra.mrb[4].mxu0 %vm171_vm2, %v245_v38 }
 0x4ad   :  { %1736 = vmatpush3.bf16.msra.mxu0 %v372_v37  ;;  %1737 = vmatprep.mubr.msk.bf16.mxu0 %vm1950_vm1, %v1949_v15  ;;  %v1910_v39 = vpop.eup %1909 }
 0x4ae   :  { %1749 = vmatprep.subr.bf16.mxu0 %v1949_v15  ;;  %v368_v41 = vmul.f32 %v1910_v39, %v1902_v22 }
 0x4b1   :  { %v1912_v40 = vpop.eup %1911 }
 0x4b2   :  { %v369_v42 = vmul.f32 %v1912_v40, %v1904_v24  ;;  %v1873_v40 = vld [vmem:[%s2373_s9] sm:$0xff]  }
 0x4b4   :  { %v370_v43 = vpack.c.bf16 %v369_v42, %v368_v41  ;;  %v1874_v41 = vld [vmem:[%s2373_s9 + $0x8] sm:$0xff]   ;;  %v1875_v42 = vld [vmem:[%s2373_s9 + $0x10] sm:$0xff]  }
 0x4b6   :  { %1738 = vmatmul.mubr.msk.bf16.vlgmr.msra.gmra.mrb[8].mxu0 %vm171_vm2, %v370_v43  ;;  %v1876_v43 = vld [vmem:[%s2373_s9 + $0x18] sm:$0xff]  }
 0x4b7   :  { %1753 = vmatprep.mubr.msk.bf16.mxu0 %vm1950_vm1, %v1949_v15  ;;  %1750 = vmatpush3.bf16.msra.mxu0 %v1871_v19 }
 0x4b8   :  { %1751 = vmatprep.subr.bf16.mxu0 %v1949_v15 }
 0x4bb   :  { %1752 = vmatpush3.bf16.msra.mxu0 %v1872_v20 }
 0x4bc   :  { %1769 = vmatprep.subr.bf16.mxu0 %v1949_v15 }
 0x57f   :  { %v286_v45 = vpop.f32.mrb[4].mxu0 }
 0x580   :  { %v1727_v46 = vpop.f32.mrb[5].mxu0 }
 0x581   :  { %v289_v47 = vpop.f32.mrb[6].mxu0 }
 0x582   :  { %v1728_v49 = vpop.f32.mrb[7].mxu0 }
 0x589   :  { %v411_v51 = vpop.f32.mrb[8].mxu0 }
 0x58a   :  { %v1739_v53 = vpop.f32.mrb[9].mxu0 }
 0x58b   :  { %v414_v54 = vpop.f32.mrb[10].mxu0 }
 0x58c   :  { %v1857_v55 = vpack.i.bf16 %v414_v54, %v411_v51  ;;  %v1740_v56 = vpop.f32.mrb[11].mxu0 }
 0x58e   :  { %1858 = vrot.lane.b32.xlu1 %v1857_v55, %s1956_s20 }
 0x600   :  { %v1859_v57 = vpop.permute.xlu1 %1858 }
 0x601   :  { %v1861_v58 = vunpack.i.h.bf16 %v1859_v57  ;;  %v1860_v59 = vunpack.i.l.bf16 %v1859_v57 }
 0x603   :  { %v427_v60 = vsel %vm171_vm2, %v289_v47, %v1861_v58  ;;  %v426_v61 = vsel %vm171_vm2, %v286_v45, %v1860_v59 }
 0x604   :  { %v428_v62 = vpack.c.bf16 %v427_v60, %v426_v61 }
 0x606   :  { %1746 = vmatmul.mubr.msk.bf16.vlgmr.msra.gmra.mrb[8].mxu1 %vm53_vm0, %v428_v62 }
 0x607   :  { %1765 = vmatprep.mubr.msk.bf16.mxu1 %vm1950_vm1, %v1949_v15  ;;  %1758 = vmatpush3.bf16.msra.mxu1 %v1873_v40 }
 0x608   :  { %1759 = vmatprep.subr.bf16.mxu1 %v1949_v15 }
 0x60b   :  { %1760 = vmatpush3.bf16.msra.mxu1 %v1874_v41 }
 0x60c   :  { %1761 = vmatprep.subr.bf16.mxu1 %v1949_v15 }
 0x60f   :  { %1762 = vmatpush3.bf16.msra.mxu1 %v1875_v42 }
 0x610   :  { %1763 = vmatprep.subr.bf16.mxu1 %v1949_v15 }
 0x613   :  { %1764 = vmatpush3.bf16.msra.mxu1 %v1876_v43 }
 0x614   :  { %1783 = vmatprep.subr.bf16.mxu1 %v1949_v15 }
 0x6d9   :  { %v482_v63 = vpop.f32.mrb[8].mxu1 }
 0x6da   :  { %v500_v1 = vadd.f32 %v482_v63, %v2062_v31  ;;  %v1747_v2 = vpop.f32.mrb[9].mxu1 }
 0x6db   :  { %v485_v3 = vpop.f32.mrb[10].mxu1 }
 0x6dc   :  { %v501_v4 = vadd.f32 %v485_v3, %v2064_v32  ;;  %v1748_v5 = vpop.f32.mrb[11].mxu1  ;;  %v508_v6 = vadd.f32 %v1578_v0, %v500_v1 }
 0x6de   :  { %v510_v7 = vsel %vm53_vm0, %v508_v6, 0.0  ;;  %v509_v8 = vadd.f32 %v1578_v0, %v501_v4 }
 0x6df   :  { %511 = vadd.xlane.f32.xlu1 %v510_v7 }
 0x6e0   :  { %v513_v9 = vsel %vm53_vm0, %v509_v8, 0.0 }
 0x6e1   :  { %514 = vadd.xlane.f32.xlu0 %v513_v9 }
 0x76c   :  { %v512_v10 = vpop.xlane.xlu1 %511 }
 0x76d   :  { %v516_v11 = vmul.f32 0.03125, %v512_v10 }
 0x76e   :  { %v515_v12 = vpop.xlane.xlu0 %514 }
 0x76f   :  { %v518_v13 = vsub.f32 %v508_v6, %v516_v11  ;;  %v517_v14 = vmul.f32 0.03125, %v515_v12 }
 0x771   :  { %v519_v16 = vsub.f32 %v509_v8, %v517_v14  ;;  %v520_v31 = vmul.f32 %v518_v13, %v518_v13  ;;  %v1585_v8 = vld [vmem:[%s2371_s6 + $0x3] ss:$0 sm:$0xff] }
 0x773   :  { %v522_v17 = vsel %vm53_vm0, %v520_v31, 0.0  ;;  %v521_v18 = vmul.f32 %v519_v16, %v519_v16 }
 0x774   :  { %523 = vadd.xlane.f32.xlu0 %v522_v17 }
 0x775   :  { %v525_v32 = vsel %vm53_vm0, %v521_v18, 0.0 }
 0x776   :  { %526 = vadd.xlane.f32.xlu1 %v525_v32 }
 0x801   :  { %v524_v21 = vpop.xlane.xlu0 %523 }
 0x802   :  { %v528_v22 = vmul.f32 0.03125, %v524_v21 }
 0x803   :  { %v527_v23 = vpop.xlane.xlu1 %526 }
 0x804   :  { %v530_v24 = vadd.f32 1e-05, %v528_v22  ;;  %v529_v25 = vmul.f32 0.03125, %v527_v23 }
 0x806   :  { %1913 = vrsqrt.f32 %v530_v24  ;;  %v531_v26 = vadd.f32 1e-05, %v529_v25 }
 0x808   :  { %1915 = vrsqrt.f32 %v531_v26 }
 0x810   :  { %v1914_v27 = vpop.eup %1913 }
 0x811   :  { %v534_v29 = vmul.f32 %v1914_v27, %v518_v13 }
 0x812   :  { %v1916_v30 = vpop.eup %1915 }
 0x813   :  { %v542_v33 = vmul.f32 %v1579_v28, %v534_v29  ;;  %v535_v34 = vmul.f32 %v1916_v30, %v519_v16  ;;  %v1878_v29 = vld [vmem:[%s2366_s3 + $0x18] sm:$0xff]  }
 0x815   :  { %v543_v36 = vmul.f32 %v1579_v28, %v535_v34  ;;  %v550_v37 = vadd.f32 %v1580_v35, %v542_v33  ;;  %v1877_v28 = vld [vmem:[%s2366_s3 + $0x10] sm:$0xff]  }
 0x817   :  { %v551_v38 = vadd.f32 %v1580_v35, %v543_v36 }
 0x819   :  { %v552_v39 = vpack.c.bf16 %v551_v38, %v550_v37 }
 0x81b   :  { %1754 = vmatmul.mubr.msk.bf16.vlgmr.msra.gmra.mrb[12].mxu0 %vm53_vm0, %v552_v39  ;;  %v1591_v39 = vld [vmem:[%s2371_s6 + $0x4] ss:$0 sm:$0xff] }
 0x81c   :  { %1773 = vmatprep.mubr.msk.bf16.mxu0 %vm1950_vm1, %v1949_v15  ;;  %1770 = vmatpush3.bf16.msra.mxu0 %v1877_v28 }
 0x81d   :  { %1771 = vmatprep.subr.bf16.mxu0 %v1949_v15 }
 0x820   :  { %1772 = vmatpush3.bf16.msra.mxu0 %v1878_v29 }
 0x821   :  { %1777 = vmatprep.subr.bf16.mxu0 %v1949_v15 }
 0x8ee   :  { %v613_v45 = vpop.f32.mrb[12].mxu0 }
 0x8ef   :  { %v614_v46 = vadd.f32 %v1581_v44, %v613_v45  ;;  %v1755_v47 = vpop.f32.mrb[13].mxu0 }
 0x8f0   :  { %v616_v49 = vpop.f32.mrb[14].mxu0 }
 0x8f1   :  { %v622_v50 = vmul.f32 0.044715, %v614_v46  ;;  %v617_v51 = vadd.f32 %v1581_v44, %v616_v49  ;;  %v1756_v53 = vpop.f32.mrb[15].mxu0  ;;  %v620_v2 = vmul.f32 0.5, %v614_v46  ;;  %v1592_v44 = vld [vmem:[%s2371_s6 + $0x5] ss:$0 sm:$0xff] }
 0x8f3   :  { %v624_v54 = vmul.f32 %v622_v50, %v614_v46  ;;  %v623_v55 = vmul.f32 0.044715, %v617_v51  ;;  %v621_v3 = vmul.f32 0.5, %v617_v51  ;;  %v1598_v50 = vld [vmem:[%s2368_s4 + $0x1] ss:$0 sm:$0xff] }
 0x8f5   :  { %v626_v56 = vmul.f32 %v624_v54, %v614_v46  ;;  %v625_v57 = vmul.f32 %v623_v55, %v617_v51 }
 0x8f7   :  { %v628_v58 = vadd.f32 %v626_v56, %v614_v46  ;;  %v627_v59 = vmul.f32 %v625_v57, %v617_v51 }
 0x8f9   :  { %v630_v60 = vmul.f32 0.7978846, %v628_v58  ;;  %v629_v61 = vadd.f32 %v627_v59, %v617_v51 }
 0x8fb   :  { %1917 = vtanh.f32 %v630_v60  ;;  %v631_v62 = vmul.f32 0.7978846, %v629_v61 }
 0x8fd   :  { %1919 = vtanh.f32 %v631_v62 }
 0x905   :  { %v1918_v63 = vpop.eup %1917 }
 0x906   :  { %v634_v0 = vadd.f32 1.0, %v1918_v63 }
 0x907   :  { %v1920_v1 = vpop.eup %1919 }
 0x908   :  { %v635_v4 = vadd.f32 1.0, %v1920_v1  ;;  %v636_v5 = vmul.f32 %v634_v0, %v620_v2 }
 0x90a   :  { %v637_v6 = vmul.f32 %v635_v4, %v621_v3 }
 0x90c   :  { %v638_v7 = vpack.c.bf16 %v637_v6, %v636_v5 }
 0x90e   :  { %1766 = vmatmul.mubr.msk.bf16.vlgmr.msra.gmra.mrb[12].mxu1 %vm677_vm3, %v638_v7 }
 0x90f   :  { %1785 = vmatprep.mubr.msk.bf16.mxu1 %vm1950_vm1, %v1949_v15 }
 0x9e1   :  { %v715_v9 = vpop.f32.mrb[12].mxu1 }
 0x9e2   :  { %v716_v10 = vadd.f32 %v1585_v8, %v715_v9  ;;  %v1767_v11 = vpop.f32.mrb[13].mxu1 }
 0x9e3   :  { %v718_v12 = vpop.f32.mrb[14].mxu1 }
 0x9e4   :  { %v719_v13 = vadd.f32 %v1585_v8, %v718_v12  ;;  %v1768_v14 = vpop.f32.mrb[15].mxu1  ;;  %v722_v16 = vadd.f32 %v716_v10, %v550_v37 }
 0x9e6   :  { %v724_v31 = vsel %vm53_vm0, %v722_v16, 0.0  ;;  %v723_v17 = vadd.f32 %v719_v13, %v551_v38 }
 0x9e7   :  { %725 = vadd.xlane.f32.xlu0 %v724_v31 }
 0x9e8   :  { %v727_v18 = vsel %vm53_vm0, %v723_v17, 0.0 }
 0x9e9   :  { %728 = vadd.xlane.f32.xlu1 %v727_v18 }
 0xa74   :  { %v726_v32 = vpop.xlane.xlu0 %725 }
 0xa75   :  { %v730_v19 = vmul.f32 0.03125, %v726_v32 }
 0xa76   :  { %v729_v20 = vpop.xlane.xlu1 %728 }
 0xa77   :  { %v732_v21 = vsub.f32 %v722_v16, %v730_v19  ;;  %v731_v22 = vmul.f32 0.03125, %v729_v20 }
 0xa79   :  { %v733_v23 = vsub.f32 %v723_v17, %v731_v22  ;;  %v734_v24 = vmul.f32 %v732_v21, %v732_v21 }
 0xa7b   :  { %v736_v25 = vsel %vm53_vm0, %v734_v24, 0.0  ;;  %v735_v26 = vmul.f32 %v733_v23, %v733_v23 }
 0xa7c   :  { %737 = vadd.xlane.f32.xlu0 %v736_v25 }
 0xa7d   :  { %v739_v27 = vsel %vm53_vm0, %v735_v26, 0.0 }
 0xa7e   :  { %740 = vadd.xlane.f32.xlu1 %v739_v27 }
 0xb09   :  { %v738_v30 = vpop.xlane.xlu0 %737 }
 0xb0a   :  { %v742_v33 = vmul.f32 0.03125, %v738_v30 }
 0xb0b   :  { %v741_v34 = vpop.xlane.xlu1 %740 }
 0xb0c   :  { %v744_v35 = vadd.f32 1e-05, %v742_v33  ;;  %v743_v36 = vmul.f32 0.03125, %v741_v34 }
 0xb0e   :  { %1921 = vrsqrt.f32 %v744_v35  ;;  %v745_v37 = vadd.f32 1e-05, %v743_v36 }
 0xb10   :  { %1923 = vrsqrt.f32 %v745_v37 }
 0xb18   :  { %v1922_v38 = vpop.eup %1921 }
 0xb19   :  { %v748_v40 = vmul.f32 %v1922_v38, %v732_v21 }
 0xb1a   :  { %v1924_v41 = vpop.eup %1923 }
 0xb1b   :  { %v756_v42 = vmul.f32 %v1591_v39, %v748_v40  ;;  %v749_v43 = vmul.f32 %v1924_v41, %v733_v23 }
 0xb1d   :  { %v757_v45 = vmul.f32 %v1591_v39, %v749_v43  ;;  %v2210_v46 = vadd.f32 %v1592_v44, %v756_v42 }
 0xb1f   :  { %v765_v47 = vadd.f32 %v1592_v44, %v757_v45 }
 0xb21   :  { %v766_v49 = vpack.c.bf16 %v765_v47, %v2210_v46 }
 0xb23   :  { %1774 = vmatmul.mubr.msk.bf16.vlgmr.msra.gmra.mrb[16].mxu0 %vm53_vm0, %v766_v49 }
 0xb24   :  { %1779 = vmatprep.mubr.msk.bf16.mxu0 %vm1950_vm1, %v1949_v15 }
 0xbf6   :  { %v829_v51 = vpop.f32.mrb[16].mxu0 }
 0xbf7   :  { %v1775_v53 = vpop.f32.mrb[17].mxu0  ;;  %v830_v55 = vadd.f32 %v1598_v50, %v829_v51 }
 0xbf8   :  { %v832_v54 = vpop.f32.mrb[18].mxu0 }
 0xbf9   :  { %v833_v56 = vadd.f32 %v1598_v50, %v832_v54  ;;  %v1776_v57 = vpop.f32.mrb[19].mxu0 }
 0xbfb   :  { %v2219_v58 = vpack.c.bf16 %v833_v56, %v830_v55 }
 0xbfd   :  { %963 = vrot.lane.b32.xlu1 %v2219_v58, %s1951_s2  ;;  %838 = vrot.lane.b32.xlu0 %v2219_v58, %s1952_s26 }
 0xc01   :  { %961 = vrot.lane.b32.xlu1 %v2219_v58, %s1953_s27 }
 0xc6f   :  { %v839_v59 = vpop.permute.xlu0 %838  ;;  %v964_v61 = vpop.permute.xlu1 %963 }
 0xc70   :  { %v844_v60 = vsel %vm171_vm2, %v839_v59, 0  ;;  %v969_v62 = vsel %vm171_vm2, %v964_v61, 0 }
 0xc71   :  { %1778 = vmatpush3.bf16.xpose.msra.mxu0 %v844_v60 }
 0xc72   :  { %1789 = vmatprep.subr.bf16.mxu0 %v1949_v15 }
 0xc73   :  { %v962_v63 = vpop.permute.xlu1 %961 }
 0xc78   :  { %1780 = vmatmul.mubr.msk.bf16.vlgmr.msra.gmra.mrb[20].mxu0 %vm171_vm2, %v2219_v58 }
 0xc79   :  { %1790 = vmatpush3.bf16.xpose.msra.mxu0 %v969_v62  ;;  %1791 = vmatprep.mubr.msk.bf16.mxu0 %vm1950_vm1, %v1949_v15 }
 0xc7a   :  { %1801 = vmatprep.subr.bf16.mxu0 %v1949_v15 }
 0xc80   :  { %1792 = vmatmul.mubr.msk.bf16.vlgmr.msra.gmra.mrb[24].mxu0 %vm171_vm2, %v962_v63  ;;  %v1880_v63 = vld [vmem:[%s2370_s5 + $0x18] sm:$0xff]  }
 0xc81   :  { %1805 = vmatprep.mubr.msk.bf16.mxu0 %vm1950_vm1, %v1949_v15 }
 0xd4b   :  { %v880_v0 = vpop.f32.mrb[20].mxu0 }
 0xd4c   :  { %v887_v1 = vmul.f32 0.25, %v880_v0  ;;  %v1781_v2 = vpop.f32.mrb[21].mxu0 }
 0xd4d   :  { %v883_v3 = vpop.f32.mrb[22].mxu0 }
 0xd4e   :  { %v888_v4 = vmul.f32 0.25, %v883_v3  ;;  %v1782_v5 = vpop.f32.mrb[23].mxu0  ;;  %v889_v6 = vadd.f32 %v887_v1, %v2096_v48 }
 0xd50   :  { %v891_v7 = vsel %vm171_vm2, %v889_v6, -inf  ;;  %v890_v8 = vadd.f32 %v888_v4, %v2101_v52 }
 0xd51   :  { %892 = vmax.xlane.f32.xlu1 %v891_v7 }
 0xd52   :  { %v894_v9 = vsel %vm171_vm2, %v890_v8, -inf }
 0xd53   :  { %895 = vmax.xlane.f32.xlu0 %v894_v9  ;;  %v1005_v10 = vpop.f32.mrb[24].mxu0 }
 0xd54   :  { %v1012_v11 = vmul.f32 0.25, %v1005_v10  ;;  %v1793_v12 = vpop.f32.mrb[25].mxu0 }
 0xd55   :  { %v1008_v13 = vpop.f32.mrb[26].mxu0  ;;  %v1619_v12 = vld [vmem:[%s2371_s6 + $0x6] ss:$0 sm:$0xff] }
 0xd56   :  { %v1013_v14 = vmul.f32 0.25, %v1008_v13  ;;  %v1794_v16 = vpop.f32.mrb[27].mxu0  ;;  %v1014_v31 = vadd.f32 %v1012_v11, %v2096_v48 }
 0xd58   :  { %v1016_v17 = vsel %vm171_vm2, %v1014_v31, -inf  ;;  %v1015_v18 = vadd.f32 %v1013_v14, %v2101_v52 }
 0xd59   :  { %1017 = vmax.xlane.f32.xlu0 %v1016_v17 }
 0xd5a   :  { %v1019_v32 = vsel %vm171_vm2, %v1015_v18, -inf }
 0xd5d   :  { %1020 = vmax.xlane.f32.xlu0 %v1019_v32 }
 0xdde   :  { %v893_v19 = vpop.xlane.xlu1 %892 }
 0xddf   :  { %v897_v20 = vsub.f32 %v889_v6, %v893_v19 }
 0xde0   :  { %v896_v21 = vpop.xlane.xlu0 %895 }
 0xde1   :  { %v899_v22 = vmul.f32 1.442695, %v897_v20  ;;  %v898_v23 = vsub.f32 %v890_v8, %v896_v21 }
 0xde3   :  { %1925 = vpow2.f32 %v899_v22  ;;  %v901_v24 = vmul.f32 1.442695, %v898_v23  ;;  %v1881_v23 = vld [vmem:[%s2372_s7 + $0x10] sm:$0xff]  }
 0xde5   :  { %1927 = vpow2.f32 %v901_v24 }
 0xde6   :  { %v1018_v25 = vpop.xlane.xlu0 %1017 }
 0xde7   :  { %v1022_v26 = vsub.f32 %v1014_v31, %v1018_v25 }
 0xde9   :  { %v1024_v27 = vmul.f32 1.442695, %v1022_v26 }
 0xdea   :  { %v1021_v48 = vpop.xlane.xlu0 %1020 }
 0xdeb   :  { %1929 = vpow2.f32 %v1024_v27  ;;  %v1023_v28 = vsub.f32 %v1015_v18, %v1021_v48  ;;  %v1620_v48 = vld [vmem:[%s2371_s6 + $0x7] ss:$0 sm:$0xff] }
 0xded   :  { %v1926_v29 = vpop.eup %1925  ;;  %v1026_v52 = vmul.f32 1.442695, %v1023_v28 }
 0xdee   :  { %v903_v30 = vsel %vm171_vm2, %v1926_v29, 0.0 }
 0xdef   :  { %v1928_v33 = vpop.eup %1927  ;;  %1931 = vpow2.f32 %v1026_v52  ;;  %904 = vadd.xlane.f32.xlu1 %v903_v30 }
 0xdf0   :  { %v906_v34 = vsel %vm171_vm2, %v1928_v33, 0.0 }
 0xdf1   :  { %907 = vadd.xlane.f32.xlu0 %v906_v34  ;;  %v1883_v34 = vld [vmem:[%s2373_s9 + $0x20] sm:$0xff]  }
 0xdf5   :  { %v1930_v35 = vpop.eup %1929 }
 0xdf6   :  { %v1028_v36 = vsel %vm171_vm2, %v1930_v35, 0.0 }
 0xdf7   :  { %1029 = vadd.xlane.f32.xlu1 %v1028_v36  ;;  %v1885_v36 = vld [vmem:[%s2373_s9 + $0x30] sm:$0xff]  }
 0xdf9   :  { %v1932_v37 = vpop.eup %1931 }
 0xdfa   :  { %v1031_v38 = vsel %vm171_vm2, %v1932_v37, 0.0 }
 0xdfb   :  { %1032 = vadd.xlane.f32.xlu0 %v1031_v38  ;;  %v1627_v38 = vld [vmem:[%s2374_s8 + $0x1] ss:$0 sm:$0xff] }
 0xe08   :  { %914 = vrot.lane.b32.xlu1 %v2219_v58, %s1954_s1 }
 0xe11   :  { %1039 = vrot.lane.b32.xlu0 %v2219_v58, %s1955_s16  ;;  %v1879_v58 = vld [vmem:[%s2370_s5 + $0x10] sm:$0xff]  }
 0xe12   :  { %1802 = vmatpush3.bf16.msra.mxu0 %v1879_v58 }
 0xe13   :  { %1803 = vmatprep.subr.bf16.mxu0 %v1949_v15 }
 0xe16   :  { %1804 = vmatpush3.bf16.msra.mxu0 %v1880_v63 }
 0xe17   :  { %1817 = vmatprep.subr.bf16.mxu0 %v1949_v15 }
 0xe7c   :  { %v905_v39 = vpop.xlane.xlu1 %904 }
 0xe7d   :  { %1933 = vrcp.f32 %v905_v39 }
 0xe7e   :  { %v908_v40 = vpop.xlane.xlu0 %907 }
 0xe7f   :  { %1935 = vrcp.f32 %v908_v40 }
 0xe84   :  { %v1030_v41 = vpop.xlane.xlu1 %1029 }
 0xe85   :  { %1937 = vrcp.f32 %v1030_v41 }
 0xe87   :  { %v1934_v42 = vpop.eup %1933 }
 0xe88   :  { %v915_v43 = vpop.permute.xlu1 %914  ;;  %v1033_v44 = vpop.xlane.xlu0 %1032  ;;  %v911_v47 = vmul.f32 %v1934_v42, %v1926_v29  ;;  %v1621_v29 = vld [vmem:[%s2371_s6 + $0x8] ss:$0 sm:$0xff] }
 0xe89   :  { %v1936_v45 = vpop.eup %1935  ;;  %1939 = vrcp.f32 %v1033_v44  ;;  %1784 = vmatpush3.bf16.msra.mxu1 %v915_v43 }
 0xe8a   :  { %v912_v49 = vmul.f32 %v1936_v45, %v1928_v33  ;;  %1795 = vmatprep.subr.bf16.mxu1 %v1949_v15 }
 0xe8c   :  { %v1040_v50 = vpop.permute.xlu0 %1039  ;;  %v913_v51 = vpack.c.bf16 %v912_v49, %v911_v47 }
 0xe8e   :  { %1786 = vmatmul.mubr.msk.bf16.vlgmr.msra.gmra.mrb[16].mxu1 %vm171_vm2, %v913_v51 }
 0xe8f   :  { %1796 = vmatpush3.bf16.msra.mxu1 %v1040_v50  ;;  %1797 = vmatprep.mubr.msk.bf16.mxu1 %vm1950_vm1, %v1949_v15  ;;  %v1938_v53 = vpop.eup %1937 }
 0xe90   :  { %1809 = vmatprep.subr.bf16.mxu1 %v1949_v15  ;;  %v1036_v55 = vmul.f32 %v1938_v53, %v1930_v35  ;;  %v1884_v35 = vld [vmem:[%s2373_s9 + $0x28] sm:$0xff]  }
 0xe93   :  { %v1940_v54 = vpop.eup %1939 }
 0xe94   :  { %v1037_v56 = vmul.f32 %v1940_v54, %v1932_v37  ;;  %v1886_v37 = vld [vmem:[%s2373_s9 + $0x38] sm:$0xff]  }
 0xe96   :  { %v1038_v57 = vpack.c.bf16 %v1037_v56, %v1036_v55 }
 0xe98   :  { %1798 = vmatmul.mubr.msk.bf16.vlgmr.msra.gmra.mrb[20].mxu1 %vm171_vm2, %v1038_v57  ;;  %v1639_v57 = vld [vmem:[%s2371_s6 + $0x9] ss:$0 sm:$0xff] }
 0xe99   :  { %1813 = vmatprep.mubr.msk.bf16.mxu1 %vm1950_vm1, %v1949_v15  ;;  %1810 = vmatpush3.bf16.msra.mxu1 %v1881_v23 }
 0xe9a   :  { %1811 = vmatprep.subr.bf16.mxu1 %v1949_v15 }
 0xf61   :  { %v954_v59 = vpop.f32.mrb[16].mxu1 }
 0xf62   :  { %v1787_v60 = vpop.f32.mrb[17].mxu1 }
 0xf63   :  { %v957_v61 = vpop.f32.mrb[18].mxu1 }
 0xf64   :  { %v1788_v62 = vpop.f32.mrb[19].mxu1 }
 0xf6b   :  { %v1079_v0 = vpop.f32.mrb[20].mxu1 }
 0xf6c   :  { %v1799_v1 = vpop.f32.mrb[21].mxu1 }
 0xf6d   :  { %v1082_v2 = vpop.f32.mrb[22].mxu1 }
 0xf6e   :  { %v1862_v3 = vpack.i.bf16 %v1082_v2, %v1079_v0  ;;  %v1800_v4 = vpop.f32.mrb[23].mxu1 }
 0xf70   :  { %1863 = vrot.lane.b32.xlu1 %v1862_v3, %s1956_s20 }
 0xfe2   :  { %v1864_v5 = vpop.permute.xlu1 %1863 }
 0xfe3   :  { %v1866_v6 = vunpack.i.h.bf16 %v1864_v5  ;;  %v1865_v7 = vunpack.i.l.bf16 %v1864_v5 }
 0xfe5   :  { %v1095_v8 = vsel %vm171_vm2, %v957_v61, %v1866_v6  ;;  %v1094_v9 = vsel %vm171_vm2, %v954_v59, %v1865_v7  ;;  %v1887_v6 = vld [vmem:[%s2375_s10] sm:$0xff]   ;;  %v1888_v7 = vld [vmem:[%s2375_s10 + $0x8] sm:$0xff]  }
 0xfe6   :  { %v1096_v10 = vpack.c.bf16 %v1095_v8, %v1094_v9 }
 0xfe8   :  { %1806 = vmatmul.mubr.msk.bf16.vlgmr.msra.gmra.mrb[28].mxu0 %vm53_vm0, %v1096_v10 }
 0xfe9   :  { %1825 = vmatprep.mubr.msk.bf16.mxu0 %vm1950_vm1, %v1949_v15  ;;  %1818 = vmatpush3.bf16.msra.mxu0 %v1883_v34 }
 0xfea   :  { %1819 = vmatprep.subr.bf16.mxu0 %v1949_v15 }
 0xfed   :  { %1820 = vmatpush3.bf16.msra.mxu0 %v1884_v35  ;;  %v1651_v35 = vld [vmem:[%s2378_s13] ss:$0 sm:$0xff] }
 0xfee   :  { %1821 = vmatprep.subr.bf16.mxu0 %v1949_v15 }
 0xff1   :  { %1822 = vmatpush3.bf16.msra.mxu0 %v1885_v36 }
 0xff2   :  { %1823 = vmatprep.subr.bf16.mxu0 %v1949_v15 }
 0xff5   :  { %1824 = vmatpush3.bf16.msra.mxu0 %v1886_v37 }
0x10bb   :  { %v1151_v11 = vpop.f32.mrb[28].mxu0 }
0x10bc   :  { %v1169_v13 = vadd.f32 %v1151_v11, %v2210_v46  ;;  %v1807_v14 = vpop.f32.mrb[29].mxu0  ;;  %v1882_v46 = vld [vmem:[%s2372_s7 + $0x18] sm:$0xff]  }
0x10bd   :  { %v1154_v16 = vpop.f32.mrb[30].mxu0  ;;  %1812 = vmatpush3.bf16.msra.mxu1 %v1882_v46  ;;  %v1646_v14 = vld [vmem:[%s2371_s6 + $0xb] ss:$0 sm:$0xff] }
0x10be   :  { %v1808_v31 = vpop.f32.mrb[31].mxu0  ;;  %v1176_v17 = vadd.f32 %v1619_v12, %v1169_v13  ;;  %1829 = vmatprep.subr.bf16.mxu1 %v1949_v15  ;;  %v1645_v12 = vld [vmem:[%s2371_s6 + $0xa] ss:$0 sm:$0xff] }
0x10c0   :  { %v1178_v18 = vsel %vm1177_vm4, %v1176_v17, 0.0 }
0x10c1   :  { %1179 = vadd.xlane.f32.xlu1 %v1178_v18  ;;  %v1889_v18 = vld [vmem:[%s2376_s12] sm:$0xff]  }
0x114e   :  { %v1180_v32 = vpop.xlane.xlu1 %1179 }
0x114f   :  { %v1181_v19 = vmul.f32 0.03125, %v1180_v32  ;;  %v1890_v32 = vld [vmem:[%s2376_s12 + $0x8] sm:$0xff]  }
0x1151   :  { %v1182_v20 = vsub.f32 %v1176_v17, %v1181_v19  ;;  %v1891_v19 = vld [vmem:[%s2376_s12 + $0x10] sm:$0xff]  }
0x1153   :  { %v1183_v21 = vmul.f32 %v1182_v20, %v1182_v20 }
0x1155   :  { %v1184_v22 = vsel %vm1177_vm4, %v1183_v21, 0.0  ;;  %v1647_v21 = vld [vmem:[%s2377_s11] ss:$0 sm:$0xff] }
0x1156   :  { %1185 = vadd.xlane.f32.xlu0 %v1184_v22 }
0x11e3   :  { %v1186_v24 = vpop.xlane.xlu0 %1185 }
0x11e4   :  { %v1187_v25 = vmul.f32 0.03125, %v1186_v24 }
0x11e6   :  { %v1188_v26 = vadd.f32 1e-05, %v1187_v25 }
0x11e8   :  { %1941 = vrsqrt.f32 %v1188_v26 }
0x11f2   :  { %v1942_v27 = vpop.eup %1941 }
0x11f3   :  { %v1190_v28 = vmul.f32 %v1942_v27, %v1182_v20  ;;  %v1892_v20 = vld [vmem:[%s2376_s12 + $0x18] sm:$0xff]  }
0x11f5   :  { %v1197_v52 = vmul.f32 %v1620_v48, %v1190_v28 }
0x11f7   :  { %v1204_v30 = vadd.f32 %v1621_v29, %v1197_v52 }
0x11f9   :  { %v1205_v33 = vpack.c.bf16 %v1204_v30, %v1204_v30 }
0x11fb   :  { %1814 = vmatmul.mubr.msk.bf16.vlgmr.msra.gmra.mrb[24].mxu1 %vm53_vm0, %v1205_v33 }
0x11fc   :  { %1833 = vmatprep.mubr.msk.bf16.mxu1 %vm1950_vm1, %v1949_v15  ;;  %1830 = vmatpush3.bf16.msra.mxu1 %v1887_v6 }
0x11fd   :  { %1831 = vmatprep.subr.bf16.mxu1 %v1949_v15 }
0x1200   :  { %1832 = vmatpush3.bf16.msra.mxu1 %v1888_v7 }
0x1201   :  { %1837 = vmatprep.subr.bf16.mxu1 %v1949_v15 }
0x12ce   :  { %v1268_v39 = vpop.f32.mrb[24].mxu1 }
0x12cf   :  { %v1269_v40 = vadd.f32 %v1627_v38, %v1268_v39  ;;  %v1815_v41 = vpop.f32.mrb[25].mxu1 }
0x12d0   :  { %v1271_v42 = vpop.f32.mrb[26].mxu1 }
0x12d1   :  { %v1275_v43 = vmul.f32 0.044715, %v1269_v40  ;;  %v1816_v44 = vpop.f32.mrb[27].mxu1  ;;  %v1274_v53 = vmul.f32 0.5, %v1269_v40 }
0x12d3   :  { %v1276_v45 = vmul.f32 %v1275_v43, %v1269_v40 }
0x12d5   :  { %v1277_v47 = vmul.f32 %v1276_v45, %v1269_v40 }
0x12d7   :  { %v1278_v49 = vadd.f32 %v1277_v47, %v1269_v40 }
0x12d9   :  { %v1279_v50 = vmul.f32 0.7978846, %v1278_v49 }
0x12db   :  { %1943 = vtanh.f32 %v1279_v50 }
0x12e5   :  { %v1944_v51 = vpop.eup %1943 }
0x12e6   :  { %v1281_v54 = vadd.f32 1.0, %v1944_v51 }
0x12e8   :  { %v1282_v55 = vmul.f32 %v1281_v54, %v1274_v53 }
0x12ea   :  { %v1283_v56 = vpack.c.bf16 %v1282_v55, %v1282_v55 }
0x12ec   :  { %1826 = vmatmul.mubr.msk.bf16.vlgmr.msra.gmra.mrb[32].mxu0 %vm677_vm3, %v1283_v56 }
0x13bf   :  { %v1360_v58 = vpop.f32.mrb[32].mxu0 }
0x13c0   :  { %v1361_v59 = vadd.f32 %v1639_v57, %v1360_v58  ;;  %v1827_v60 = vpop.f32.mrb[33].mxu0 }
0x13c1   :  { %v1363_v61 = vpop.f32.mrb[34].mxu0 }
0x13c2   :  { %v1828_v62 = vpop.f32.mrb[35].mxu0  ;;  %v1366_v63 = vadd.f32 %v1361_v59, %v1204_v30 }
0x13c4   :  { %v1367_v0 = vsel %vm1177_vm4, %v1366_v63, 0.0 }
0x13c5   :  { %1368 = vadd.xlane.f32.xlu0 %v1367_v0 }
0x1452   :  { %v1369_v1 = vpop.xlane.xlu0 %1368 }
0x1453   :  { %v1370_v2 = vmul.f32 0.03125, %v1369_v1 }
0x1455   :  { %v1371_v3 = vsub.f32 %v1366_v63, %v1370_v2 }
0x1457   :  { %v1372_v4 = vmul.f32 %v1371_v3, %v1371_v3 }
0x1459   :  { %v1373_v5 = vsel %vm1177_vm4, %v1372_v4, 0.0 }
0x145a   :  { %1374 = vadd.xlane.f32.xlu1 %v1373_v5 }
0x14e7   :  { %v1375_v8 = vpop.xlane.xlu1 %1374 }
0x14e8   :  { %v1376_v9 = vmul.f32 0.03125, %v1375_v8 }
0x14ea   :  { %v1377_v10 = vadd.f32 1e-05, %v1376_v9 }
0x14ec   :  { %1945 = vrsqrt.f32 %v1377_v10 }
0x14f6   :  { %v1946_v11 = vpop.eup %1945 }
0x14f7   :  { %v1379_v13 = vmul.f32 %v1946_v11, %v1371_v3 }
0x14f9   :  { %v1386_v16 = vmul.f32 %v1645_v12, %v1379_v13 }
0x14fb   :  { %v1393_v31 = vadd.f32 %v1646_v14, %v1386_v16 }
0x14fd   :  { %v1394_v17 = vpack.c.bf16 %v1393_v31, %v1393_v31 }
0x14ff   :  { %1834 = vmatmul.mubr.msk.bf16.vlgmr.msra.gmra.mrb[28].mxu1 %vm53_vm0, %v1394_v17 }
0x1500   :  { %1845 = vmatprep.mubr.msk.bf16.mxu1 %vm1950_vm1, %v1949_v15  ;;  %1838 = vmatpush3.bf16.msra.mxu1 %v1889_v18 }
0x1501   :  { %1839 = vmatprep.subr.bf16.mxu1 %v1949_v15 }
0x1504   :  { %1840 = vmatpush3.bf16.msra.mxu1 %v1890_v32 }
0x1505   :  { %1841 = vmatprep.subr.bf16.mxu1 %v1949_v15 }
0x1508   :  { %1842 = vmatpush3.bf16.msra.mxu1 %v1891_v19 }
0x1509   :  { %1843 = vmatprep.subr.bf16.mxu1 %v1949_v15 }
0x150c   :  { %1844 = vmatpush3.bf16.msra.mxu1 %v1892_v20 }
0x15d2   :  { %v1455_v22 = vpop.f32.mrb[28].mxu1 }
0x15d3   :  { %v1456_v23 = vadd.f32 %v1647_v21, %v1455_v22  ;;  %v1835_v46 = vpop.f32.mrb[29].mxu1 }
0x15d4   :  { %v1458_v24 = vpop.f32.mrb[30].mxu1 }
0x15d5   :  { %v1462_v25 = vmul.f32 0.044715, %v1456_v23  ;;  %v1836_v26 = vpop.f32.mrb[31].mxu1  ;;  %v1461_v30 = vmul.f32 0.5, %v1456_v23 }
0x15d7   :  { %v1463_v27 = vmul.f32 %v1462_v25, %v1456_v23 }
0x15d9   :  { %v1464_v48 = vmul.f32 %v1463_v27, %v1456_v23 }
0x15db   :  { %v1465_v28 = vadd.f32 %v1464_v48, %v1456_v23 }
0x15dd   :  { %v1466_v29 = vmul.f32 0.7978846, %v1465_v28 }
0x15df   :  { %1947 = vtanh.f32 %v1466_v29 }
0x15e9   :  { %v1948_v52 = vpop.eup %1947 }
0x15ea   :  { %v1468_v33 = vadd.f32 1.0, %v1948_v52 }
0x15ec   :  { %v1469_v15 = vmul.f32 %v1468_v33, %v1461_v30 }
0x15ee   :  { %v1470_v34 = vpack.c.bf16 %v1469_v15, %v1469_v15 }
0x15f0   :  { %1846 = vmatmul.mubr.msk.bf16.vlgmr.msra.gmra.mrb[32].mxu1 %vm677_vm3, %v1470_v34 }
0x16c3   :  { %v1547_v36 = vpop.f32.mrb[32].mxu1 }
0x16c4   :  { %v1548_v37 = vadd.f32 %v1651_v35, %v1547_v36  ;;  %v1847_v38 = vpop.f32.mrb[33].mxu1 }
0x16c5   :  { %v1550_v39 = vpop.f32.mrb[34].mxu1 }
0x16c6   :  { %1554 = vst.msk [vmem:[%s2379_s14] sm:$0x3] %vm1553_vm5, %v1548_v37  ;;  %v1848_v40 = vpop.f32.mrb[35].mxu1 }

</bundles_post_ra>
